<compile_context>
chip_gen: v7x
topology: tpu7x:2x2x1
jax: 0.10.0
libtpu: 0.0.40
codegen_flags: <defaults>
</compile_context>

<pallas_src>
import functools

import jax
import jax.numpy as jnp
from jax import lax
from jax.experimental import pallas as pl
from jax.experimental.pallas import tpu as pltpu


def _bilstm_selector_kernel(x_ref,       # (T*B, D)        time-major, padded batch
                            wih_ref,     # (D, 8H)         [Wih_f^T | Wih_b^T]
                            bg_ref,      # (1, 8H)         [b_f | b_b] (ih+hh combined)
                            whh_ref,     # (2H, 8H)        block-diag [Whh_f^T ; Whh_b^T]
                            wlf_ref,     # (H, 1)
                            wlb_ref,     # (H, 1)
                            bl_ref,      # (1, 1)
                            out_ref,     # (T*B, 1)
                            xgf_ref,     # scratch (T*B, 4H) fwd input projection
                            xgb_ref,     # scratch (T*B, 4H) bwd input projection
                            hf_ref,      # scratch (T*B, H)  fwd hidden history
                            hb_ref,      # scratch (T*B, H)  bwd hidden history
                            *, T, B, H):
    G = 4 * H

    # ---- Hoisted input projection: one (T*B, D) @ (D, 8H) MXU matmul, bias folded.
    xg = (jnp.dot(x_ref[...], wih_ref[...], preferred_element_type=jnp.float32)
          + bg_ref[...])                                  # (T*B, 8H)
    xgf_ref[...] = xg[:, :G]                              # vreg-aligned lane split
    xgb_ref[...] = xg[:, G:]

    whh = whh_ref[...]                                    # loop-invariant, hoisted

    def body(t, carry):
        h, c_f, c_b = carry                               # h: (B, 2H)
        rt = T - 1 - t

        # One fused recurrent matmul per step for both directions.
        rec = jnp.dot(h, whh, preferred_element_type=jnp.float32)   # (B, 8H)

        row_f = pl.multiple_of(t * B, B)
        row_b = pl.multiple_of(rt * B, B)
        gf = rec[:, :G] + xgf_ref[pl.ds(row_f, B), :]     # (B, 4H) fwd gates
        gb = rec[:, G:] + xgb_ref[pl.ds(row_b, B), :]     # (B, 4H) bwd gates

        # Full-vreg transcendentals (EUP), then narrow lane slices to combine.
        sf = jax.nn.sigmoid(gf)
        tf_ = jnp.tanh(gf)
        sb = jax.nn.sigmoid(gb)
        tb_ = jnp.tanh(gb)

        # PyTorch gate order [i, f, g, o].
        c_f = sf[:, H:2 * H] * c_f + sf[:, :H] * tf_[:, 2 * H:3 * H]
        c_b = sb[:, H:2 * H] * c_b + sb[:, :H] * tb_[:, 2 * H:3 * H]
        h_f = sf[:, 3 * H:] * jnp.tanh(c_f)
        h_b = sb[:, 3 * H:] * jnp.tanh(c_b)

        # History stored directly in the epilogue matmul layout (T*B, H).
        hf_ref[pl.ds(row_f, B), :] = h_f
        hb_ref[pl.ds(row_b, B), :] = h_b

        return (jnp.concatenate([h_f, h_b], axis=-1), c_f, c_b)

    h0 = jnp.zeros((B, 2 * H), jnp.float32)
    c0 = jnp.zeros((B, H), jnp.float32)
    lax.fori_loop(0, T, body, (h0, c0, c0), unroll=True)

    # Final linear: [h_fwd ; h_bwd] @ W_lin^T + b_lin as two (T*B,H)@(H,1) matmuls.
    out_ref[...] = (jnp.dot(hf_ref[...], wlf_ref[...], preferred_element_type=jnp.float32)
                    + jnp.dot(hb_ref[...], wlb_ref[...], preferred_element_type=jnp.float32)
                    + bl_ref[...])


def lstm_selector_forward(pool, params):
    """pool: (B, T, D) float32 -> logits (B, T) float32, PyTorch semantics."""
    B, T, D = pool.shape
    H = params["whh_f"].shape[1]          # weight_hh is (4H, H)
    G = 4 * H

    # Pad batch to the sublane granule (8 rows) so every vreg / MXU row is used.
    B_pad = max(8, ((B + 7) // 8) * 8)

    x_tbd = jnp.transpose(pool, (1, 0, 2)).astype(jnp.float32)        # (T, B, D)
    if B_pad != B:
        x_tbd = jnp.pad(x_tbd, ((0, 0), (0, B_pad - B), (0, 0)))
    x2 = x_tbd.reshape(T * B_pad, D)

    # Fused input-projection weights + combined biases.
    wih_cat = jnp.concatenate([params["wih_f"].T, params["wih_b"].T],
                              axis=1).astype(jnp.float32)             # (D, 8H)
    b_cat = jnp.concatenate([params["bih_f"] + params["bhh_f"],
                             params["bih_b"] + params["bhh_b"]]
                            ).reshape(1, 2 * G).astype(jnp.float32)   # (1, 8H)

    # Block-diagonal fused recurrent weight (2H, 8H).
    whh_cat = jnp.zeros((2 * H, 2 * G), jnp.float32)
    whh_cat = whh_cat.at[:H, :G].set(params["whh_f"].T.astype(jnp.float32))
    whh_cat = whh_cat.at[H:, G:].set(params["whh_b"].T.astype(jnp.float32))

    wlin = params["wlin"].astype(jnp.float32)                         # (1, 2H)
    wlf = wlin[:, :H].T                                               # (H, 1)
    wlb = wlin[:, H:].T                                               # (H, 1)
    bl = params["blin"].reshape(1, 1).astype(jnp.float32)

    vmem = pltpu.MemorySpace.VMEM
    kernel = functools.partial(_bilstm_selector_kernel, T=T, B=B_pad, H=H)

    out_flat = pl.pallas_call(
        kernel,
        out_shape=jax.ShapeDtypeStruct((T * B_pad, 1), jnp.float32),
        in_specs=[pl.BlockSpec(memory_space=vmem)] * 7,
        out_specs=pl.BlockSpec(memory_space=vmem),
        scratch_shapes=[pltpu.VMEM((T * B_pad, G), jnp.float32),
                        pltpu.VMEM((T * B_pad, G), jnp.float32),
                        pltpu.VMEM((T * B_pad, H), jnp.float32),
                        pltpu.VMEM((T * B_pad, H), jnp.float32)],
    )(x2, wih_cat, b_cat, whh_cat, wlf, wlb, bl)

    return out_flat.reshape(T, B_pad)[:, :B].T                        # (B, T)


def lstm_selector_ref(pool, params):
    """Pure-JAX reference (mirrors torch.nn.LSTM bidirectional + Linear)."""
    B, T, D = pool.shape
    H = params["whh_f"].shape[1]

    def run(wih, whh, bih, bhh, xs):
        def step(carry, x_t):
            h, c = carry
            gates = x_t @ wih.T + h @ whh.T + bih + bhh
            i = jax.nn.sigmoid(gates[:, :H])
            f = jax.nn.sigmoid(gates[:, H:2 * H])
            g = jnp.tanh(gates[:, 2 * H:3 * H])
            o = jax.nn.sigmoid(gates[:, 3 * H:])
            c = f * c + i * g
            h = o * jnp.tanh(c)
            return (h, c), h
        init = (jnp.zeros((B, H), jnp.float32), jnp.zeros((B, H), jnp.float32))
        _, hs = lax.scan(step, init, xs)
        return hs                                                     # (T, B, H)

    xs = jnp.transpose(pool, (1, 0, 2))
    hf = run(params["wih_f"], params["whh_f"], params["bih_f"], params["bhh_f"], xs)
    hb = run(params["wih_b"], params["whh_b"], params["bih_b"], params["bhh_b"], xs[::-1])[::-1]
    hcat = jnp.concatenate([hf, hb], axis=-1)                         # (T, B, 2H)
    out = jnp.einsum("tbh,oh->tbo", hcat, params["wlin"]) + params["blin"]
    return out[..., 0].T                                              # (B, T)


if __name__ == "__main__":
    B, T, D, H = 2, 8, 32, 32     # batch, pool_size, input_size, hidden_size

    key = jax.random.PRNGKey(0)
    ks = jax.random.split(key, 11)
    bound = 1.0 / (H ** 0.5)

    def u(k, shape):
        return jax.random.uniform(k, shape, jnp.float32, -bound, bound)

    params = dict(
        wih_f=u(ks[0], (4 * H, D)), whh_f=u(ks[1], (4 * H, H)),
        bih_f=u(ks[2], (4 * H,)),   bhh_f=u(ks[3], (4 * H,)),
        wih_b=u(ks[4], (4 * H, D)), whh_b=u(ks[5], (4 * H, H)),
        bih_b=u(ks[6], (4 * H,)),   bhh_b=u(ks[7], (4 * H,)),
        wlin=u(ks[8], (1, 2 * H)),  blin=u(ks[9], (1,)),
    )
    pool = jax.random.normal(ks[10], (B, T, D), jnp.float32)

    out = jax.block_until_ready(lstm_selector_forward(pool, params))
    ref = jax.block_until_ready(lstm_selector_ref(pool, params))

    assert out.shape == (B, T), out.shape
    assert jnp.allclose(out, ref, rtol=1e-4, atol=1e-4), (
        f"max abs err {jnp.max(jnp.abs(out - ref))}")
    print("KERNEL_OK")
</pallas_src>

<mosaic_0001>
module attributes {stable_mosaic.version = 11 : i64} {
  func.func @_bilstm_selector_kernel(%arg0: memref<64x32xf32, #tpu.memory_space<vmem>>, %arg1: memref<32x256xf32, #tpu.memory_space<vmem>>, %arg2: memref<1x256xf32, #tpu.memory_space<vmem>>, %arg3: memref<64x256xf32, #tpu.memory_space<vmem>>, %arg4: memref<32x1xf32, #tpu.memory_space<vmem>>, %arg5: memref<32x1xf32, #tpu.memory_space<vmem>>, %arg6: memref<1x1xf32, #tpu.memory_space<vmem>>, %arg7: memref<64x1xf32, #tpu.memory_space<vmem>>, %arg8: memref<64x128xf32, #tpu.memory_space<vmem>>, %arg9: memref<64x128xf32, #tpu.memory_space<vmem>>, %arg10: memref<64x32xf32, #tpu.memory_space<vmem>>, %arg11: memref<64x32xf32, #tpu.memory_space<vmem>>) attributes {dimension_semantics = [], scalar_prefetch = 0 : i64, scratch_operands = 4 : i64, tpu.core_type = #tpu.core_type<tc>} {
    %c0 = arith.constant 0 : index
    %c0_0 = arith.constant 0 : index
    %0 = vector.load %arg0[%c0, %c0_0] : memref<64x32xf32, #tpu.memory_space<vmem>>, vector<64x32xf32>
    %c0_1 = arith.constant 0 : index
    %c0_2 = arith.constant 0 : index
    %1 = vector.load %arg1[%c0_1, %c0_2] : memref<32x256xf32, #tpu.memory_space<vmem>>, vector<32x256xf32>
    %cst = arith.constant dense<0.000000e+00> : vector<64x256xf32>
    %2 = tpu.matmul %0, %1, %cst {dimension_numbers = #tpu.dot_dimension_numbers<[1], [0], [0], [1], [0, 0, 1, 1], [], []>} : vector<64x32xf32>, vector<32x256xf32>, vector<64x256xf32> -> vector<64x256xf32>
    %c0_3 = arith.constant 0 : index
    %c0_4 = arith.constant 0 : index
    %3 = vector.load %arg2[%c0_3, %c0_4] : memref<1x256xf32, #tpu.memory_space<vmem>>, vector<1x256xf32>
    %4 = vector.broadcast %3 : vector<1x256xf32> to vector<64x256xf32>
    %5 = arith.addf %2, %4 : vector<64x256xf32>
    %6 = vector.extract_strided_slice %5 {offsets = [0, 0], sizes = [64, 128], strides = [1, 1]} : vector<64x256xf32> to vector<64x128xf32>
    %c0_5 = arith.constant 0 : index
    %c0_6 = arith.constant 0 : index
    %7 = vector.load %arg8[%c0_5, %c0_6] : memref<64x128xf32, #tpu.memory_space<vmem>>, vector<64x128xf32>
    tpu.vector_store %arg8[%c0_5, %c0_6], %6 {strides = array<i32>} : memref<64x128xf32, #tpu.memory_space<vmem>>, vector<64x128xf32>,
    %8 = vector.extract_strided_slice %5 {offsets = [0, 128], sizes = [64, 128], strides = [1, 1]} : vector<64x256xf32> to vector<64x128xf32>
    %c0_7 = arith.constant 0 : index
    %c0_8 = arith.constant 0 : index
    %9 = vector.load %arg9[%c0_7, %c0_8] : memref<64x128xf32, #tpu.memory_space<vmem>>, vector<64x128xf32>
    tpu.vector_store %arg9[%c0_7, %c0_8], %8 {strides = array<i32>} : memref<64x128xf32, #tpu.memory_space<vmem>>, vector<64x128xf32>,
    %c0_9 = arith.constant 0 : index
    %c0_10 = arith.constant 0 : index
    %10 = vector.load %arg3[%c0_9, %c0_10] : memref<64x256xf32, #tpu.memory_space<vmem>>, vector<64x256xf32>
    %cst_11 = arith.constant 0.000000e+00 : f32
    %11 = vector.broadcast %cst_11 : f32 to vector<8x64xf32>
    %cst_12 = arith.constant 0.000000e+00 : f32
    %12 = vector.broadcast %cst_12 : f32 to vector<8x32xf32>
    %c0_i32 = arith.constant 0 : i32
    %c7_i32 = arith.constant 7 : i32
    %13 = arith.subi %c7_i32, %c0_i32 : i32
    %cst_13 = arith.constant dense<0.000000e+00> : vector<8x256xf32>
    %14 = tpu.matmul %11, %10, %cst_13 {dimension_numbers = #tpu.dot_dimension_numbers<[1], [0], [0], [1], [0, 0, 1, 1], [], []>} : vector<8x64xf32>, vector<64x256xf32>, vector<8x256xf32> -> vector<8x256xf32>
    %c8_i32 = arith.constant 8 : i32
    %15 = arith.muli %c0_i32, %c8_i32 : i32
    %16 = tpu.assume_multiple %15, 8 : i32
    %c8_i32_14 = arith.constant 8 : i32
    %17 = arith.muli %13, %c8_i32_14 : i32
    %18 = tpu.assume_multiple %17, 8 : i32
    %19 = vector.extract_strided_slice %14 {offsets = [0, 0], sizes = [8, 128], strides = [1, 1]} : vector<8x256xf32> to vector<8x128xf32>
    %20 = arith.index_cast %16 : i32 to index
    %c0_15 = arith.constant 0 : index
    %21 = vector.load %arg8[%20, %c0_15] : memref<64x128xf32, #tpu.memory_space<vmem>>, vector<8x128xf32>
    %22 = arith.addf %19, %21 : vector<8x128xf32>
    %23 = vector.extract_strided_slice %14 {offsets = [0, 128], sizes = [8, 128], strides = [1, 1]} : vector<8x256xf32> to vector<8x128xf32>
    %24 = arith.index_cast %18 : i32 to index
    %c0_16 = arith.constant 0 : index
    %25 = vector.load %arg9[%24, %c0_16] : memref<64x128xf32, #tpu.memory_space<vmem>>, vector<8x128xf32>
    %26 = arith.addf %23, %25 : vector<8x128xf32>
    %27 = arith.negf %22 : vector<8x128xf32>
    %28 = math.exp %27 : vector<8x128xf32>
    %cst_17 = arith.constant 1.000000e+00 : f32
    %29 = vector.broadcast %cst_17 : f32 to vector<8x128xf32>
    %30 = arith.addf %29, %28 : vector<8x128xf32>
    %31 = arith.divf %29, %30 : vector<8x128xf32>
    %32 = math.tanh %22 : vector<8x128xf32>
    %33 = arith.negf %26 : vector<8x128xf32>
    %34 = math.exp %33 : vector<8x128xf32>
    %cst_18 = arith.constant 1.000000e+00 : f32
    %35 = vector.broadcast %cst_18 : f32 to vector<8x128xf32>
    %36 = arith.addf %35, %34 : vector<8x128xf32>
    %37 = arith.divf %35, %36 : vector<8x128xf32>
    %38 = math.tanh %26 : vector<8x128xf32>
    %39 = vector.extract_strided_slice %31 {offsets = [0, 32], sizes = [8, 32], strides = [1, 1]} : vector<8x128xf32> to vector<8x32xf32>
    %40 = arith.mulf %39, %12 : vector<8x32xf32>
    %41 = vector.extract_strided_slice %31 {offsets = [0, 0], sizes = [8, 32], strides = [1, 1]} : vector<8x128xf32> to vector<8x32xf32>
    %42 = vector.extract_strided_slice %32 {offsets = [0, 64], sizes = [8, 32], strides = [1, 1]} : vector<8x128xf32> to vector<8x32xf32>
    %43 = arith.mulf %41, %42 : vector<8x32xf32>
    %44 = arith.addf %40, %43 : vector<8x32xf32>
    %45 = vector.extract_strided_slice %37 {offsets = [0, 32], sizes = [8, 32], strides = [1, 1]} : vector<8x128xf32> to vector<8x32xf32>
    %46 = arith.mulf %45, %12 : vector<8x32xf32>
    %47 = vector.extract_strided_slice %37 {offsets = [0, 0], sizes = [8, 32], strides = [1, 1]} : vector<8x128xf32> to vector<8x32xf32>
    %48 = vector.extract_strided_slice %38 {offsets = [0, 64], sizes = [8, 32], strides = [1, 1]} : vector<8x128xf32> to vector<8x32xf32>
    %49 = arith.mulf %47, %48 : vector<8x32xf32>
    %50 = arith.addf %46, %49 : vector<8x32xf32>
    %51 = vector.extract_strided_slice %31 {offsets = [0, 96], sizes = [8, 32], strides = [1, 1]} : vector<8x128xf32> to vector<8x32xf32>
    %52 = math.tanh %44 : vector<8x32xf32>
    %53 = arith.mulf %51, %52 : vector<8x32xf32>
    %54 = vector.extract_strided_slice %37 {offsets = [0, 96], sizes = [8, 32], strides = [1, 1]} : vector<8x128xf32> to vector<8x32xf32>
    %55 = math.tanh %50 : vector<8x32xf32>
    %56 = arith.mulf %54, %55 : vector<8x32xf32>
    %57 = arith.index_cast %16 : i32 to index
    %c0_19 = arith.constant 0 : index
    %58 = vector.load %arg10[%57, %c0_19] : memref<64x32xf32, #tpu.memory_space<vmem>>, vector<8x32xf32>
    tpu.vector_store %arg10[%57, %c0_19], %53 {strides = array<i32>} : memref<64x32xf32, #tpu.memory_space<vmem>>, vector<8x32xf32>,
    %59 = arith.index_cast %18 : i32 to index
    %c0_20 = arith.constant 0 : index
    %60 = vector.load %arg11[%59, %c0_20] : memref<64x32xf32, #tpu.memory_space<vmem>>, vector<8x32xf32>
    tpu.vector_store %arg11[%59, %c0_20], %56 {strides = array<i32>} : memref<64x32xf32, #tpu.memory_space<vmem>>, vector<8x32xf32>,
    %61 = tpu.concatenate %53, %56 in 1 : vector<8x32xf32>, vector<8x32xf32> -> vector<8x64xf32>
    %c1_i32 = arith.constant 1 : i32
    %c7_i32_21 = arith.constant 7 : i32
    %62 = arith.subi %c7_i32_21, %c1_i32 : i32
    %cst_22 = arith.constant dense<0.000000e+00> : vector<8x256xf32>
    %63 = tpu.matmul %61, %10, %cst_22 {dimension_numbers = #tpu.dot_dimension_numbers<[1], [0], [0], [1], [0, 0, 1, 1], [], []>} : vector<8x64xf32>, vector<64x256xf32>, vector<8x256xf32> -> vector<8x256xf32>
    %c8_i32_23 = arith.constant 8 : i32
    %64 = arith.muli %c1_i32, %c8_i32_23 : i32
    %65 = tpu.assume_multiple %64, 8 : i32
    %c8_i32_24 = arith.constant 8 : i32
    %66 = arith.muli %62, %c8_i32_24 : i32
    %67 = tpu.assume_multiple %66, 8 : i32
    %68 = vector.extract_strided_slice %63 {offsets = [0, 0], sizes = [8, 128], strides = [1, 1]} : vector<8x256xf32> to vector<8x128xf32>
    %69 = arith.index_cast %65 : i32 to index
    %c0_25 = arith.constant 0 : index
    %70 = vector.load %arg8[%69, %c0_25] : memref<64x128xf32, #tpu.memory_space<vmem>>, vector<8x128xf32>
    %71 = arith.addf %68, %70 : vector<8x128xf32>
    %72 = vector.extract_strided_slice %63 {offsets = [0, 128], sizes = [8, 128], strides = [1, 1]} : vector<8x256xf32> to vector<8x128xf32>
    %73 = arith.index_cast %67 : i32 to index
    %c0_26 = arith.constant 0 : index
    %74 = vector.load %arg9[%73, %c0_26] : memref<64x128xf32, #tpu.memory_space<vmem>>, vector<8x128xf32>
    %75 = arith.addf %72, %74 : vector<8x128xf32>
    %76 = arith.negf %71 : vector<8x128xf32>
    %77 = math.exp %76 : vector<8x128xf32>
    %cst_27 = arith.constant 1.000000e+00 : f32
    %78 = vector.broadcast %cst_27 : f32 to vector<8x128xf32>
    %79 = arith.addf %78, %77 : vector<8x128xf32>
    %80 = arith.divf %78, %79 : vector<8x128xf32>
    %81 = math.tanh %71 : vector<8x128xf32>
    %82 = arith.negf %75 : vector<8x128xf32>
    %83 = math.exp %82 : vector<8x128xf32>
    %cst_28 = arith.constant 1.000000e+00 : f32
    %84 = vector.broadcast %cst_28 : f32 to vector<8x128xf32>
    %85 = arith.addf %84, %83 : vector<8x128xf32>
    %86 = arith.divf %84, %85 : vector<8x128xf32>
    %87 = math.tanh %75 : vector<8x128xf32>
    %88 = vector.extract_strided_slice %80 {offsets = [0, 32], sizes = [8, 32], strides = [1, 1]} : vector<8x128xf32> to vector<8x32xf32>
    %89 = arith.mulf %88, %44 : vector<8x32xf32>
    %90 = vector.extract_strided_slice %80 {offsets = [0, 0], sizes = [8, 32], strides = [1, 1]} : vector<8x128xf32> to vector<8x32xf32>
    %91 = vector.extract_strided_slice %81 {offsets = [0, 64], sizes = [8, 32], strides = [1, 1]} : vector<8x128xf32> to vector<8x32xf32>
    %92 = arith.mulf %90, %91 : vector<8x32xf32>
    %93 = arith.addf %89, %92 : vector<8x32xf32>
    %94 = vector.extract_strided_slice %86 {offsets = [0, 32], sizes = [8, 32], strides = [1, 1]} : vector<8x128xf32> to vector<8x32xf32>
    %95 = arith.mulf %94, %50 : vector<8x32xf32>
    %96 = vector.extract_strided_slice %86 {offsets = [0, 0], sizes = [8, 32], strides = [1, 1]} : vector<8x128xf32> to vector<8x32xf32>
    %97 = vector.extract_strided_slice %87 {offsets = [0, 64], sizes = [8, 32], strides = [1, 1]} : vector<8x128xf32> to vector<8x32xf32>
    %98 = arith.mulf %96, %97 : vector<8x32xf32>
    %99 = arith.addf %95, %98 : vector<8x32xf32>
    %100 = vector.extract_strided_slice %80 {offsets = [0, 96], sizes = [8, 32], strides = [1, 1]} : vector<8x128xf32> to vector<8x32xf32>
    %101 = math.tanh %93 : vector<8x32xf32>
    %102 = arith.mulf %100, %101 : vector<8x32xf32>
    %103 = vector.extract_strided_slice %86 {offsets = [0, 96], sizes = [8, 32], strides = [1, 1]} : vector<8x128xf32> to vector<8x32xf32>
    %104 = math.tanh %99 : vector<8x32xf32>
    %105 = arith.mulf %103, %104 : vector<8x32xf32>
    %106 = arith.index_cast %65 : i32 to index
    %c0_29 = arith.constant 0 : index
    %107 = vector.load %arg10[%106, %c0_29] : memref<64x32xf32, #tpu.memory_space<vmem>>, vector<8x32xf32>
    tpu.vector_store %arg10[%106, %c0_29], %102 {strides = array<i32>} : memref<64x32xf32, #tpu.memory_space<vmem>>, vector<8x32xf32>,
    %108 = arith.index_cast %67 : i32 to index
    %c0_30 = arith.constant 0 : index
    %109 = vector.load %arg11[%108, %c0_30] : memref<64x32xf32, #tpu.memory_space<vmem>>, vector<8x32xf32>
    tpu.vector_store %arg11[%108, %c0_30], %105 {strides = array<i32>} : memref<64x32xf32, #tpu.memory_space<vmem>>, vector<8x32xf32>,
    %110 = tpu.concatenate %102, %105 in 1 : vector<8x32xf32>, vector<8x32xf32> -> vector<8x64xf32>
    %c2_i32 = arith.constant 2 : i32
    %c7_i32_31 = arith.constant 7 : i32
    %111 = arith.subi %c7_i32_31, %c2_i32 : i32
    %cst_32 = arith.constant dense<0.000000e+00> : vector<8x256xf32>
    %112 = tpu.matmul %110, %10, %cst_32 {dimension_numbers = #tpu.dot_dimension_numbers<[1], [0], [0], [1], [0, 0, 1, 1], [], []>} : vector<8x64xf32>, vector<64x256xf32>, vector<8x256xf32> -> vector<8x256xf32>
    %c8_i32_33 = arith.constant 8 : i32
    %113 = arith.muli %c2_i32, %c8_i32_33 : i32
    %114 = tpu.assume_multiple %113, 8 : i32
    %c8_i32_34 = arith.constant 8 : i32
    %115 = arith.muli %111, %c8_i32_34 : i32
    %116 = tpu.assume_multiple %115, 8 : i32
    %117 = vector.extract_strided_slice %112 {offsets = [0, 0], sizes = [8, 128], strides = [1, 1]} : vector<8x256xf32> to vector<8x128xf32>
    %118 = arith.index_cast %114 : i32 to index
    %c0_35 = arith.constant 0 : index
    %119 = vector.load %arg8[%118, %c0_35] : memref<64x128xf32, #tpu.memory_space<vmem>>, vector<8x128xf32>
    %120 = arith.addf %117, %119 : vector<8x128xf32>
    %121 = vector.extract_strided_slice %112 {offsets = [0, 128], sizes = [8, 128], strides = [1, 1]} : vector<8x256xf32> to vector<8x128xf32>
    %122 = arith.index_cast %116 : i32 to index
    %c0_36 = arith.constant 0 : index
    %123 = vector.load %arg9[%122, %c0_36] : memref<64x128xf32, #tpu.memory_space<vmem>>, vector<8x128xf32>
    %124 = arith.addf %121, %123 : vector<8x128xf32>
    %125 = arith.negf %120 : vector<8x128xf32>
    %126 = math.exp %125 : vector<8x128xf32>
    %cst_37 = arith.constant 1.000000e+00 : f32
    %127 = vector.broadcast %cst_37 : f32 to vector<8x128xf32>
    %128 = arith.addf %127, %126 : vector<8x128xf32>
    %129 = arith.divf %127, %128 : vector<8x128xf32>
    %130 = math.tanh %120 : vector<8x128xf32>
    %131 = arith.negf %124 : vector<8x128xf32>
    %132 = math.exp %131 : vector<8x128xf32>
    %cst_38 = arith.constant 1.000000e+00 : f32
    %133 = vector.broadcast %cst_38 : f32 to vector<8x128xf32>
    %134 = arith.addf %133, %132 : vector<8x128xf32>
    %135 = arith.divf %133, %134 : vector<8x128xf32>
    %136 = math.tanh %124 : vector<8x128xf32>
    %137 = vector.extract_strided_slice %129 {offsets = [0, 32], sizes = [8, 32], strides = [1, 1]} : vector<8x128xf32> to vector<8x32xf32>
    %138 = arith.mulf %137, %93 : vector<8x32xf32>
    %139 = vector.extract_strided_slice %129 {offsets = [0, 0], sizes = [8, 32], strides = [1, 1]} : vector<8x128xf32> to vector<8x32xf32>
    %140 = vector.extract_strided_slice %130 {offsets = [0, 64], sizes = [8, 32], strides = [1, 1]} : vector<8x128xf32> to vector<8x32xf32>
    %141 = arith.mulf %139, %140 : vector<8x32xf32>
    %142 = arith.addf %138, %141 : vector<8x32xf32>
    %143 = vector.extract_strided_slice %135 {offsets = [0, 32], sizes = [8, 32], strides = [1, 1]} : vector<8x128xf32> to vector<8x32xf32>
    %144 = arith.mulf %143, %99 : vector<8x32xf32>
    %145 = vector.extract_strided_slice %135 {offsets = [0, 0], sizes = [8, 32], strides = [1, 1]} : vector<8x128xf32> to vector<8x32xf32>
    %146 = vector.extract_strided_slice %136 {offsets = [0, 64], sizes = [8, 32], strides = [1, 1]} : vector<8x128xf32> to vector<8x32xf32>
    %147 = arith.mulf %145, %146 : vector<8x32xf32>
    %148 = arith.addf %144, %147 : vector<8x32xf32>
    %149 = vector.extract_strided_slice %129 {offsets = [0, 96], sizes = [8, 32], strides = [1, 1]} : vector<8x128xf32> to vector<8x32xf32>
    %150 = math.tanh %142 : vector<8x32xf32>
    %151 = arith.mulf %149, %150 : vector<8x32xf32>
    %152 = vector.extract_strided_slice %135 {offsets = [0, 96], sizes = [8, 32], strides = [1, 1]} : vector<8x128xf32> to vector<8x32xf32>
    %153 = math.tanh %148 : vector<8x32xf32>
    %154 = arith.mulf %152, %153 : vector<8x32xf32>
    %155 = arith.index_cast %114 : i32 to index
    %c0_39 = arith.constant 0 : index
    %156 = vector.load %arg10[%155, %c0_39] : memref<64x32xf32, #tpu.memory_space<vmem>>, vector<8x32xf32>
    tpu.vector_store %arg10[%155, %c0_39], %151 {strides = array<i32>} : memref<64x32xf32, #tpu.memory_space<vmem>>, vector<8x32xf32>,
    %157 = arith.index_cast %116 : i32 to index
    %c0_40 = arith.constant 0 : index
    %158 = vector.load %arg11[%157, %c0_40] : memref<64x32xf32, #tpu.memory_space<vmem>>, vector<8x32xf32>
    tpu.vector_store %arg11[%157, %c0_40], %154 {strides = array<i32>} : memref<64x32xf32, #tpu.memory_space<vmem>>, vector<8x32xf32>,
    %159 = tpu.concatenate %151, %154 in 1 : vector<8x32xf32>, vector<8x32xf32> -> vector<8x64xf32>
    %c3_i32 = arith.constant 3 : i32
    %c7_i32_41 = arith.constant 7 : i32
    %160 = arith.subi %c7_i32_41, %c3_i32 : i32
    %cst_42 = arith.constant dense<0.000000e+00> : vector<8x256xf32>
    %161 = tpu.matmul %159, %10, %cst_42 {dimension_numbers = #tpu.dot_dimension_numbers<[1], [0], [0], [1], [0, 0, 1, 1], [], []>} : vector<8x64xf32>, vector<64x256xf32>, vector<8x256xf32> -> vector<8x256xf32>
    %c8_i32_43 = arith.constant 8 : i32
    %162 = arith.muli %c3_i32, %c8_i32_43 : i32
    %163 = tpu.assume_multiple %162, 8 : i32
    %c8_i32_44 = arith.constant 8 : i32
    %164 = arith.muli %160, %c8_i32_44 : i32
    %165 = tpu.assume_multiple %164, 8 : i32
    %166 = vector.extract_strided_slice %161 {offsets = [0, 0], sizes = [8, 128], strides = [1, 1]} : vector<8x256xf32> to vector<8x128xf32>
    %167 = arith.index_cast %163 : i32 to index
    %c0_45 = arith.constant 0 : index
    %168 = vector.load %arg8[%167, %c0_45] : memref<64x128xf32, #tpu.memory_space<vmem>>, vector<8x128xf32>
    %169 = arith.addf %166, %168 : vector<8x128xf32>
    %170 = vector.extract_strided_slice %161 {offsets = [0, 128], sizes = [8, 128], strides = [1, 1]} : vector<8x256xf32> to vector<8x128xf32>
    %171 = arith.index_cast %165 : i32 to index
    %c0_46 = arith.constant 0 : index
    %172 = vector.load %arg9[%171, %c0_46] : memref<64x128xf32, #tpu.memory_space<vmem>>, vector<8x128xf32>
    %173 = arith.addf %170, %172 : vector<8x128xf32>
    %174 = arith.negf %169 : vector<8x128xf32>
    %175 = math.exp %174 : vector<8x128xf32>
    %cst_47 = arith.constant 1.000000e+00 : f32
    %176 = vector.broadcast %cst_47 : f32 to vector<8x128xf32>
    %177 = arith.addf %176, %175 : vector<8x128xf32>
    %178 = arith.divf %176, %177 : vector<8x128xf32>
    %179 = math.tanh %169 : vector<8x128xf32>
    %180 = arith.negf %173 : vector<8x128xf32>
    %181 = math.exp %180 : vector<8x128xf32>
    %cst_48 = arith.constant 1.000000e+00 : f32
    %182 = vector.broadcast %cst_48 : f32 to vector<8x128xf32>
    %183 = arith.addf %182, %181 : vector<8x128xf32>
    %184 = arith.divf %182, %183 : vector<8x128xf32>
    %185 = math.tanh %173 : vector<8x128xf32>
    %186 = vector.extract_strided_slice %178 {offsets = [0, 32], sizes = [8, 32], strides = [1, 1]} : vector<8x128xf32> to vector<8x32xf32>
    %187 = arith.mulf %186, %142 : vector<8x32xf32>
    %188 = vector.extract_strided_slice %178 {offsets = [0, 0], sizes = [8, 32], strides = [1, 1]} : vector<8x128xf32> to vector<8x32xf32>
    %189 = vector.extract_strided_slice %179 {offsets = [0, 64], sizes = [8, 32], strides = [1, 1]} : vector<8x128xf32> to vector<8x32xf32>
    %190 = arith.mulf %188, %189 : vector<8x32xf32>
    %191 = arith.addf %187, %190 : vector<8x32xf32>
    %192 = vector.extract_strided_slice %184 {offsets = [0, 32], sizes = [8, 32], strides = [1, 1]} : vector<8x128xf32> to vector<8x32xf32>
    %193 = arith.mulf %192, %148 : vector<8x32xf32>
    %194 = vector.extract_strided_slice %184 {offsets = [0, 0], sizes = [8, 32], strides = [1, 1]} : vector<8x128xf32> to vector<8x32xf32>
    %195 = vector.extract_strided_slice %185 {offsets = [0, 64], sizes = [8, 32], strides = [1, 1]} : vector<8x128xf32> to vector<8x32xf32>
    %196 = arith.mulf %194, %195 : vector<8x32xf32>
    %197 = arith.addf %193, %196 : vector<8x32xf32>
    %198 = vector.extract_strided_slice %178 {offsets = [0, 96], sizes = [8, 32], strides = [1, 1]} : vector<8x128xf32> to vector<8x32xf32>
    %199 = math.tanh %191 : vector<8x32xf32>
    %200 = arith.mulf %198, %199 : vector<8x32xf32>
    %201 = vector.extract_strided_slice %184 {offsets = [0, 96], sizes = [8, 32], strides = [1, 1]} : vector<8x128xf32> to vector<8x32xf32>
    %202 = math.tanh %197 : vector<8x32xf32>
    %203 = arith.mulf %201, %202 : vector<8x32xf32>
    %204 = arith.index_cast %163 : i32 to index
    %c0_49 = arith.constant 0 : index
    %205 = vector.load %arg10[%204, %c0_49] : memref<64x32xf32, #tpu.memory_space<vmem>>, vector<8x32xf32>
    tpu.vector_store %arg10[%204, %c0_49], %200 {strides = array<i32>} : memref<64x32xf32, #tpu.memory_space<vmem>>, vector<8x32xf32>,
    %206 = arith.index_cast %165 : i32 to index
    %c0_50 = arith.constant 0 : index
    %207 = vector.load %arg11[%206, %c0_50] : memref<64x32xf32, #tpu.memory_space<vmem>>, vector<8x32xf32>
    tpu.vector_store %arg11[%206, %c0_50], %203 {strides = array<i32>} : memref<64x32xf32, #tpu.memory_space<vmem>>, vector<8x32xf32>,
    %208 = tpu.concatenate %200, %203 in 1 : vector<8x32xf32>, vector<8x32xf32> -> vector<8x64xf32>
    %c4_i32 = arith.constant 4 : i32
    %c7_i32_51 = arith.constant 7 : i32
    %209 = arith.subi %c7_i32_51, %c4_i32 : i32
    %cst_52 = arith.constant dense<0.000000e+00> : vector<8x256xf32>
    %210 = tpu.matmul %208, %10, %cst_52 {dimension_numbers = #tpu.dot_dimension_numbers<[1], [0], [0], [1], [0, 0, 1, 1], [], []>} : vector<8x64xf32>, vector<64x256xf32>, vector<8x256xf32> -> vector<8x256xf32>
    %c8_i32_53 = arith.constant 8 : i32
    %211 = arith.muli %c4_i32, %c8_i32_53 : i32
    %212 = tpu.assume_multiple %211, 8 : i32
    %c8_i32_54 = arith.constant 8 : i32
    %213 = arith.muli %209, %c8_i32_54 : i32
    %214 = tpu.assume_multiple %213, 8 : i32
    %215 = vector.extract_strided_slice %210 {offsets = [0, 0], sizes = [8, 128], strides = [1, 1]} : vector<8x256xf32> to vector<8x128xf32>
    %216 = arith.index_cast %212 : i32 to index
    %c0_55 = arith.constant 0 : index
    %217 = vector.load %arg8[%216, %c0_55] : memref<64x128xf32, #tpu.memory_space<vmem>>, vector<8x128xf32>
    %218 = arith.addf %215, %217 : vector<8x128xf32>
    %219 = vector.extract_strided_slice %210 {offsets = [0, 128], sizes = [8, 128], strides = [1, 1]} : vector<8x256xf32> to vector<8x128xf32>
    %220 = arith.index_cast %214 : i32 to index
    %c0_56 = arith.constant 0 : index
    %221 = vector.load %arg9[%220, %c0_56] : memref<64x128xf32, #tpu.memory_space<vmem>>, vector<8x128xf32>
    %222 = arith.addf %219, %221 : vector<8x128xf32>
    %223 = arith.negf %218 : vector<8x128xf32>
    %224 = math.exp %223 : vector<8x128xf32>
    %cst_57 = arith.constant 1.000000e+00 : f32
    %225 = vector.broadcast %cst_57 : f32 to vector<8x128xf32>
    %226 = arith.addf %225, %224 : vector<8x128xf32>
    %227 = arith.divf %225, %226 : vector<8x128xf32>
    %228 = math.tanh %218 : vector<8x128xf32>
    %229 = arith.negf %222 : vector<8x128xf32>
    %230 = math.exp %229 : vector<8x128xf32>
    %cst_58 = arith.constant 1.000000e+00 : f32
    %231 = vector.broadcast %cst_58 : f32 to vector<8x128xf32>
    %232 = arith.addf %231, %230 : vector<8x128xf32>
    %233 = arith.divf %231, %232 : vector<8x128xf32>
    %234 = math.tanh %222 : vector<8x128xf32>
    %235 = vector.extract_strided_slice %227 {offsets = [0, 32], sizes = [8, 32], strides = [1, 1]} : vector<8x128xf32> to vector<8x32xf32>
    %236 = arith.mulf %235, %191 : vector<8x32xf32>
    %237 = vector.extract_strided_slice %227 {offsets = [0, 0], sizes = [8, 32], strides = [1, 1]} : vector<8x128xf32> to vector<8x32xf32>
    %238 = vector.extract_strided_slice %228 {offsets = [0, 64], sizes = [8, 32], strides = [1, 1]} : vector<8x128xf32> to vector<8x32xf32>
    %239 = arith.mulf %237, %238 : vector<8x32xf32>
    %240 = arith.addf %236, %239 : vector<8x32xf32>
    %241 = vector.extract_strided_slice %233 {offsets = [0, 32], sizes = [8, 32], strides = [1, 1]} : vector<8x128xf32> to vector<8x32xf32>
    %242 = arith.mulf %241, %197 : vector<8x32xf32>
    %243 = vector.extract_strided_slice %233 {offsets = [0, 0], sizes = [8, 32], strides = [1, 1]} : vector<8x128xf32> to vector<8x32xf32>
    %244 = vector.extract_strided_slice %234 {offsets = [0, 64], sizes = [8, 32], strides = [1, 1]} : vector<8x128xf32> to vector<8x32xf32>
    %245 = arith.mulf %243, %244 : vector<8x32xf32>
    %246 = arith.addf %242, %245 : vector<8x32xf32>
    %247 = vector.extract_strided_slice %227 {offsets = [0, 96], sizes = [8, 32], strides = [1, 1]} : vector<8x128xf32> to vector<8x32xf32>
    %248 = math.tanh %240 : vector<8x32xf32>
    %249 = arith.mulf %247, %248 : vector<8x32xf32>
    %250 = vector.extract_strided_slice %233 {offsets = [0, 96], sizes = [8, 32], strides = [1, 1]} : vector<8x128xf32> to vector<8x32xf32>
    %251 = math.tanh %246 : vector<8x32xf32>
    %252 = arith.mulf %250, %251 : vector<8x32xf32>
    %253 = arith.index_cast %212 : i32 to index
    %c0_59 = arith.constant 0 : index
    %254 = vector.load %arg10[%253, %c0_59] : memref<64x32xf32, #tpu.memory_space<vmem>>, vector<8x32xf32>
    tpu.vector_store %arg10[%253, %c0_59], %249 {strides = array<i32>} : memref<64x32xf32, #tpu.memory_space<vmem>>, vector<8x32xf32>,
    %255 = arith.index_cast %214 : i32 to index
    %c0_60 = arith.constant 0 : index
    %256 = vector.load %arg11[%255, %c0_60] : memref<64x32xf32, #tpu.memory_space<vmem>>, vector<8x32xf32>
    tpu.vector_store %arg11[%255, %c0_60], %252 {strides = array<i32>} : memref<64x32xf32, #tpu.memory_space<vmem>>, vector<8x32xf32>,
    %257 = tpu.concatenate %249, %252 in 1 : vector<8x32xf32>, vector<8x32xf32> -> vector<8x64xf32>
    %c5_i32 = arith.constant 5 : i32
    %c7_i32_61 = arith.constant 7 : i32
    %258 = arith.subi %c7_i32_61, %c5_i32 : i32
    %cst_62 = arith.constant dense<0.000000e+00> : vector<8x256xf32>
    %259 = tpu.matmul %257, %10, %cst_62 {dimension_numbers = #tpu.dot_dimension_numbers<[1], [0], [0], [1], [0, 0, 1, 1], [], []>} : vector<8x64xf32>, vector<64x256xf32>, vector<8x256xf32> -> vector<8x256xf32>
    %c8_i32_63 = arith.constant 8 : i32
    %260 = arith.muli %c5_i32, %c8_i32_63 : i32
    %261 = tpu.assume_multiple %260, 8 : i32
    %c8_i32_64 = arith.constant 8 : i32
    %262 = arith.muli %258, %c8_i32_64 : i32
    %263 = tpu.assume_multiple %262, 8 : i32
    %264 = vector.extract_strided_slice %259 {offsets = [0, 0], sizes = [8, 128], strides = [1, 1]} : vector<8x256xf32> to vector<8x128xf32>
    %265 = arith.index_cast %261 : i32 to index
    %c0_65 = arith.constant 0 : index
    %266 = vector.load %arg8[%265, %c0_65] : memref<64x128xf32, #tpu.memory_space<vmem>>, vector<8x128xf32>
    %267 = arith.addf %264, %266 : vector<8x128xf32>
    %268 = vector.extract_strided_slice %259 {offsets = [0, 128], sizes = [8, 128], strides = [1, 1]} : vector<8x256xf32> to vector<8x128xf32>
    %269 = arith.index_cast %263 : i32 to index
    %c0_66 = arith.constant 0 : index
    %270 = vector.load %arg9[%269, %c0_66] : memref<64x128xf32, #tpu.memory_space<vmem>>, vector<8x128xf32>
    %271 = arith.addf %268, %270 : vector<8x128xf32>
    %272 = arith.negf %267 : vector<8x128xf32>
    %273 = math.exp %272 : vector<8x128xf32>
    %cst_67 = arith.constant 1.000000e+00 : f32
    %274 = vector.broadcast %cst_67 : f32 to vector<8x128xf32>
    %275 = arith.addf %274, %273 : vector<8x128xf32>
    %276 = arith.divf %274, %275 : vector<8x128xf32>
    %277 = math.tanh %267 : vector<8x128xf32>
    %278 = arith.negf %271 : vector<8x128xf32>
    %279 = math.exp %278 : vector<8x128xf32>
    %cst_68 = arith.constant 1.000000e+00 : f32
    %280 = vector.broadcast %cst_68 : f32 to vector<8x128xf32>
    %281 = arith.addf %280, %279 : vector<8x128xf32>
    %282 = arith.divf %280, %281 : vector<8x128xf32>
    %283 = math.tanh %271 : vector<8x128xf32>
    %284 = vector.extract_strided_slice %276 {offsets = [0, 32], sizes = [8, 32], strides = [1, 1]} : vector<8x128xf32> to vector<8x32xf32>
    %285 = arith.mulf %284, %240 : vector<8x32xf32>
    %286 = vector.extract_strided_slice %276 {offsets = [0, 0], sizes = [8, 32], strides = [1, 1]} : vector<8x128xf32> to vector<8x32xf32>
    %287 = vector.extract_strided_slice %277 {offsets = [0, 64], sizes = [8, 32], strides = [1, 1]} : vector<8x128xf32> to vector<8x32xf32>
    %288 = arith.mulf %286, %287 : vector<8x32xf32>
    %289 = arith.addf %285, %288 : vector<8x32xf32>
    %290 = vector.extract_strided_slice %282 {offsets = [0, 32], sizes = [8, 32], strides = [1, 1]} : vector<8x128xf32> to vector<8x32xf32>
    %291 = arith.mulf %290, %246 : vector<8x32xf32>
    %292 = vector.extract_strided_slice %282 {offsets = [0, 0], sizes = [8, 32], strides = [1, 1]} : vector<8x128xf32> to vector<8x32xf32>
    %293 = vector.extract_strided_slice %283 {offsets = [0, 64], sizes = [8, 32], strides = [1, 1]} : vector<8x128xf32> to vector<8x32xf32>
    %294 = arith.mulf %292, %293 : vector<8x32xf32>
    %295 = arith.addf %291, %294 : vector<8x32xf32>
    %296 = vector.extract_strided_slice %276 {offsets = [0, 96], sizes = [8, 32], strides = [1, 1]} : vector<8x128xf32> to vector<8x32xf32>
    %297 = math.tanh %289 : vector<8x32xf32>
    %298 = arith.mulf %296, %297 : vector<8x32xf32>
    %299 = vector.extract_strided_slice %282 {offsets = [0, 96], sizes = [8, 32], strides = [1, 1]} : vector<8x128xf32> to vector<8x32xf32>
    %300 = math.tanh %295 : vector<8x32xf32>
    %301 = arith.mulf %299, %300 : vector<8x32xf32>
    %302 = arith.index_cast %261 : i32 to index
    %c0_69 = arith.constant 0 : index
    %303 = vector.load %arg10[%302, %c0_69] : memref<64x32xf32, #tpu.memory_space<vmem>>, vector<8x32xf32>
    tpu.vector_store %arg10[%302, %c0_69], %298 {strides = array<i32>} : memref<64x32xf32, #tpu.memory_space<vmem>>, vector<8x32xf32>,
    %304 = arith.index_cast %263 : i32 to index
    %c0_70 = arith.constant 0 : index
    %305 = vector.load %arg11[%304, %c0_70] : memref<64x32xf32, #tpu.memory_space<vmem>>, vector<8x32xf32>
    tpu.vector_store %arg11[%304, %c0_70], %301 {strides = array<i32>} : memref<64x32xf32, #tpu.memory_space<vmem>>, vector<8x32xf32>,
    %306 = tpu.concatenate %298, %301 in 1 : vector<8x32xf32>, vector<8x32xf32> -> vector<8x64xf32>
    %c6_i32 = arith.constant 6 : i32
    %c7_i32_71 = arith.constant 7 : i32
    %307 = arith.subi %c7_i32_71, %c6_i32 : i32
    %cst_72 = arith.constant dense<0.000000e+00> : vector<8x256xf32>
    %308 = tpu.matmul %306, %10, %cst_72 {dimension_numbers = #tpu.dot_dimension_numbers<[1], [0], [0], [1], [0, 0, 1, 1], [], []>} : vector<8x64xf32>, vector<64x256xf32>, vector<8x256xf32> -> vector<8x256xf32>
    %c8_i32_73 = arith.constant 8 : i32
    %309 = arith.muli %c6_i32, %c8_i32_73 : i32
    %310 = tpu.assume_multiple %309, 8 : i32
    %c8_i32_74 = arith.constant 8 : i32
    %311 = arith.muli %307, %c8_i32_74 : i32
    %312 = tpu.assume_multiple %311, 8 : i32
    %313 = vector.extract_strided_slice %308 {offsets = [0, 0], sizes = [8, 128], strides = [1, 1]} : vector<8x256xf32> to vector<8x128xf32>
    %314 = arith.index_cast %310 : i32 to index
    %c0_75 = arith.constant 0 : index
    %315 = vector.load %arg8[%314, %c0_75] : memref<64x128xf32, #tpu.memory_space<vmem>>, vector<8x128xf32>
    %316 = arith.addf %313, %315 : vector<8x128xf32>
    %317 = vector.extract_strided_slice %308 {offsets = [0, 128], sizes = [8, 128], strides = [1, 1]} : vector<8x256xf32> to vector<8x128xf32>
    %318 = arith.index_cast %312 : i32 to index
    %c0_76 = arith.constant 0 : index
    %319 = vector.load %arg9[%318, %c0_76] : memref<64x128xf32, #tpu.memory_space<vmem>>, vector<8x128xf32>
    %320 = arith.addf %317, %319 : vector<8x128xf32>
    %321 = arith.negf %316 : vector<8x128xf32>
    %322 = math.exp %321 : vector<8x128xf32>
    %cst_77 = arith.constant 1.000000e+00 : f32
    %323 = vector.broadcast %cst_77 : f32 to vector<8x128xf32>
    %324 = arith.addf %323, %322 : vector<8x128xf32>
    %325 = arith.divf %323, %324 : vector<8x128xf32>
    %326 = math.tanh %316 : vector<8x128xf32>
    %327 = arith.negf %320 : vector<8x128xf32>
    %328 = math.exp %327 : vector<8x128xf32>
    %cst_78 = arith.constant 1.000000e+00 : f32
    %329 = vector.broadcast %cst_78 : f32 to vector<8x128xf32>
    %330 = arith.addf %329, %328 : vector<8x128xf32>
    %331 = arith.divf %329, %330 : vector<8x128xf32>
    %332 = math.tanh %320 : vector<8x128xf32>
    %333 = vector.extract_strided_slice %325 {offsets = [0, 32], sizes = [8, 32], strides = [1, 1]} : vector<8x128xf32> to vector<8x32xf32>
    %334 = arith.mulf %333, %289 : vector<8x32xf32>
    %335 = vector.extract_strided_slice %325 {offsets = [0, 0], sizes = [8, 32], strides = [1, 1]} : vector<8x128xf32> to vector<8x32xf32>
    %336 = vector.extract_strided_slice %326 {offsets = [0, 64], sizes = [8, 32], strides = [1, 1]} : vector<8x128xf32> to vector<8x32xf32>
    %337 = arith.mulf %335, %336 : vector<8x32xf32>
    %338 = arith.addf %334, %337 : vector<8x32xf32>
    %339 = vector.extract_strided_slice %331 {offsets = [0, 32], sizes = [8, 32], strides = [1, 1]} : vector<8x128xf32> to vector<8x32xf32>
    %340 = arith.mulf %339, %295 : vector<8x32xf32>
    %341 = vector.extract_strided_slice %331 {offsets = [0, 0], sizes = [8, 32], strides = [1, 1]} : vector<8x128xf32> to vector<8x32xf32>
    %342 = vector.extract_strided_slice %332 {offsets = [0, 64], sizes = [8, 32], strides = [1, 1]} : vector<8x128xf32> to vector<8x32xf32>
    %343 = arith.mulf %341, %342 : vector<8x32xf32>
    %344 = arith.addf %340, %343 : vector<8x32xf32>
    %345 = vector.extract_strided_slice %325 {offsets = [0, 96], sizes = [8, 32], strides = [1, 1]} : vector<8x128xf32> to vector<8x32xf32>
    %346 = math.tanh %338 : vector<8x32xf32>
    %347 = arith.mulf %345, %346 : vector<8x32xf32>
    %348 = vector.extract_strided_slice %331 {offsets = [0, 96], sizes = [8, 32], strides = [1, 1]} : vector<8x128xf32> to vector<8x32xf32>
    %349 = math.tanh %344 : vector<8x32xf32>
    %350 = arith.mulf %348, %349 : vector<8x32xf32>
    %351 = arith.index_cast %310 : i32 to index
    %c0_79 = arith.constant 0 : index
    %352 = vector.load %arg10[%351, %c0_79] : memref<64x32xf32, #tpu.memory_space<vmem>>, vector<8x32xf32>
    tpu.vector_store %arg10[%351, %c0_79], %347 {strides = array<i32>} : memref<64x32xf32, #tpu.memory_space<vmem>>, vector<8x32xf32>,
    %353 = arith.index_cast %312 : i32 to index
    %c0_80 = arith.constant 0 : index
    %354 = vector.load %arg11[%353, %c0_80] : memref<64x32xf32, #tpu.memory_space<vmem>>, vector<8x32xf32>
    tpu.vector_store %arg11[%353, %c0_80], %350 {strides = array<i32>} : memref<64x32xf32, #tpu.memory_space<vmem>>, vector<8x32xf32>,
    %355 = tpu.concatenate %347, %350 in 1 : vector<8x32xf32>, vector<8x32xf32> -> vector<8x64xf32>
    %c7_i32_81 = arith.constant 7 : i32
    %c7_i32_82 = arith.constant 7 : i32
    %356 = arith.subi %c7_i32_82, %c7_i32_81 : i32
    %cst_83 = arith.constant dense<0.000000e+00> : vector<8x256xf32>
    %357 = tpu.matmul %355, %10, %cst_83 {dimension_numbers = #tpu.dot_dimension_numbers<[1], [0], [0], [1], [0, 0, 1, 1], [], []>} : vector<8x64xf32>, vector<64x256xf32>, vector<8x256xf32> -> vector<8x256xf32>
    %c8_i32_84 = arith.constant 8 : i32
    %358 = arith.muli %c7_i32_81, %c8_i32_84 : i32
    %359 = tpu.assume_multiple %358, 8 : i32
    %c8_i32_85 = arith.constant 8 : i32
    %360 = arith.muli %356, %c8_i32_85 : i32
    %361 = tpu.assume_multiple %360, 8 : i32
    %362 = vector.extract_strided_slice %357 {offsets = [0, 0], sizes = [8, 128], strides = [1, 1]} : vector<8x256xf32> to vector<8x128xf32>
    %363 = arith.index_cast %359 : i32 to index
    %c0_86 = arith.constant 0 : index
    %364 = vector.load %arg8[%363, %c0_86] : memref<64x128xf32, #tpu.memory_space<vmem>>, vector<8x128xf32>
    %365 = arith.addf %362, %364 : vector<8x128xf32>
    %366 = vector.extract_strided_slice %357 {offsets = [0, 128], sizes = [8, 128], strides = [1, 1]} : vector<8x256xf32> to vector<8x128xf32>
    %367 = arith.index_cast %361 : i32 to index
    %c0_87 = arith.constant 0 : index
    %368 = vector.load %arg9[%367, %c0_87] : memref<64x128xf32, #tpu.memory_space<vmem>>, vector<8x128xf32>
    %369 = arith.addf %366, %368 : vector<8x128xf32>
    %370 = arith.negf %365 : vector<8x128xf32>
    %371 = math.exp %370 : vector<8x128xf32>
    %cst_88 = arith.constant 1.000000e+00 : f32
    %372 = vector.broadcast %cst_88 : f32 to vector<8x128xf32>
    %373 = arith.addf %372, %371 : vector<8x128xf32>
    %374 = arith.divf %372, %373 : vector<8x128xf32>
    %375 = math.tanh %365 : vector<8x128xf32>
    %376 = arith.negf %369 : vector<8x128xf32>
    %377 = math.exp %376 : vector<8x128xf32>
    %cst_89 = arith.constant 1.000000e+00 : f32
    %378 = vector.broadcast %cst_89 : f32 to vector<8x128xf32>
    %379 = arith.addf %378, %377 : vector<8x128xf32>
    %380 = arith.divf %378, %379 : vector<8x128xf32>
    %381 = math.tanh %369 : vector<8x128xf32>
    %382 = vector.extract_strided_slice %374 {offsets = [0, 32], sizes = [8, 32], strides = [1, 1]} : vector<8x128xf32> to vector<8x32xf32>
    %383 = arith.mulf %382, %338 : vector<8x32xf32>
    %384 = vector.extract_strided_slice %374 {offsets = [0, 0], sizes = [8, 32], strides = [1, 1]} : vector<8x128xf32> to vector<8x32xf32>
    %385 = vector.extract_strided_slice %375 {offsets = [0, 64], sizes = [8, 32], strides = [1, 1]} : vector<8x128xf32> to vector<8x32xf32>
    %386 = arith.mulf %384, %385 : vector<8x32xf32>
    %387 = arith.addf %383, %386 : vector<8x32xf32>
    %388 = vector.extract_strided_slice %380 {offsets = [0, 32], sizes = [8, 32], strides = [1, 1]} : vector<8x128xf32> to vector<8x32xf32>
    %389 = arith.mulf %388, %344 : vector<8x32xf32>
    %390 = vector.extract_strided_slice %380 {offsets = [0, 0], sizes = [8, 32], strides = [1, 1]} : vector<8x128xf32> to vector<8x32xf32>
    %391 = vector.extract_strided_slice %381 {offsets = [0, 64], sizes = [8, 32], strides = [1, 1]} : vector<8x128xf32> to vector<8x32xf32>
    %392 = arith.mulf %390, %391 : vector<8x32xf32>
    %393 = arith.addf %389, %392 : vector<8x32xf32>
    %394 = vector.extract_strided_slice %374 {offsets = [0, 96], sizes = [8, 32], strides = [1, 1]} : vector<8x128xf32> to vector<8x32xf32>
    %395 = math.tanh %387 : vector<8x32xf32>
    %396 = arith.mulf %394, %395 : vector<8x32xf32>
    %397 = vector.extract_strided_slice %380 {offsets = [0, 96], sizes = [8, 32], strides = [1, 1]} : vector<8x128xf32> to vector<8x32xf32>
    %398 = math.tanh %393 : vector<8x32xf32>
    %399 = arith.mulf %397, %398 : vector<8x32xf32>
    %400 = arith.index_cast %359 : i32 to index
    %c0_90 = arith.constant 0 : index
    %401 = vector.load %arg10[%400, %c0_90] : memref<64x32xf32, #tpu.memory_space<vmem>>, vector<8x32xf32>
    tpu.vector_store %arg10[%400, %c0_90], %396 {strides = array<i32>} : memref<64x32xf32, #tpu.memory_space<vmem>>, vector<8x32xf32>,
    %402 = arith.index_cast %361 : i32 to index
    %c0_91 = arith.constant 0 : index
    %403 = vector.load %arg11[%402, %c0_91] : memref<64x32xf32, #tpu.memory_space<vmem>>, vector<8x32xf32>
    tpu.vector_store %arg11[%402, %c0_91], %399 {strides = array<i32>} : memref<64x32xf32, #tpu.memory_space<vmem>>, vector<8x32xf32>,
    %404 = tpu.concatenate %396, %399 in 1 : vector<8x32xf32>, vector<8x32xf32> -> vector<8x64xf32>
    %c8_i32_92 = arith.constant 8 : i32
    %c0_93 = arith.constant 0 : index
    %c0_94 = arith.constant 0 : index
    %405 = vector.load %arg10[%c0_93, %c0_94] : memref<64x32xf32, #tpu.memory_space<vmem>>, vector<64x32xf32>
    %c0_95 = arith.constant 0 : index
    %c0_96 = arith.constant 0 : index
    %406 = vector.load %arg4[%c0_95, %c0_96] : memref<32x1xf32, #tpu.memory_space<vmem>>, vector<32x1xf32>
    %cst_97 = arith.constant dense<0.000000e+00> : vector<64x1xf32>
    %407 = tpu.matmul %405, %406, %cst_97 {dimension_numbers = #tpu.dot_dimension_numbers<[1], [0], [0], [1], [0, 0, 1, 1], [], []>} : vector<64x32xf32>, vector<32x1xf32>, vector<64x1xf32> -> vector<64x1xf32>
    %c0_98 = arith.constant 0 : index
    %c0_99 = arith.constant 0 : index
    %408 = vector.load %arg11[%c0_98, %c0_99] : memref<64x32xf32, #tpu.memory_space<vmem>>, vector<64x32xf32>
    %c0_100 = arith.constant 0 : index
    %c0_101 = arith.constant 0 : index
    %409 = vector.load %arg5[%c0_100, %c0_101] : memref<32x1xf32, #tpu.memory_space<vmem>>, vector<32x1xf32>
    %cst_102 = arith.constant dense<0.000000e+00> : vector<64x1xf32>
    %410 = tpu.matmul %408, %409, %cst_102 {dimension_numbers = #tpu.dot_dimension_numbers<[1], [0], [0], [1], [0, 0, 1, 1], [], []>} : vector<64x32xf32>, vector<32x1xf32>, vector<64x1xf32> -> vector<64x1xf32>
    %411 = arith.addf %407, %410 : vector<64x1xf32>
    %c0_103 = arith.constant 0 : index
    %c0_104 = arith.constant 0 : index
    %412 = vector.load %arg6[%c0_103, %c0_104] : memref<1x1xf32, #tpu.memory_space<vmem>>, vector<1x1xf32>
    %413 = vector.broadcast %412 : vector<1x1xf32> to vector<64x1xf32>
    %414 = arith.addf %411, %413 : vector<64x1xf32>
    %c0_105 = arith.constant 0 : index
    %c0_106 = arith.constant 0 : index
    %415 = vector.load %arg7[%c0_105, %c0_106] : memref<64x1xf32, #tpu.memory_space<vmem>>, vector<64x1xf32>
    tpu.vector_store %arg7[%c0_105, %c0_106], %414 {strides = array<i32>} : memref<64x1xf32, #tpu.memory_space<vmem>>, vector<64x1xf32>,
    return
  }
}

</mosaic_0001>

<bundles_post_ra>
// kernel: tpu_custom_call.1
= control target key start
LH: loop header
LB: loop body
LE: loop exit
PB: predicated region body
PF: predicated region fallthrough
CT: control target
= control target key end

     0   :  { %s2640_s0 = inlined_call_operand.vmem [shape: f32[64,32], index: 0, kind: input, shape index: {}]   ;;  %s2641_s1 = inlined_call_operand.hbm [shape: f32[32,256], index: 1, kind: input, shape index: {}]   ;;  %s2642_s2 = inlined_call_operand.vmem [shape: f32[1,256], index: 2, kind: input, shape index: {}]   ;;  %s2643_s3 = inlined_call_operand.vmem [shape: f32[64,256], index: 3, kind: input, shape index: {}]   ;;  %s2644_s4 = inlined_call_operand.vmem [shape: f32[32,1], index: 4, kind: input, shape index: {}]   ;;  %s2645_s5 = inlined_call_operand.vmem [shape: f32[32,1], index: 5, kind: input, shape index: {}]   ;;  %s2646_s6 = inlined_call_operand.<no memory space> [shape: f32[1,1], index: 6, kind: input, shape index: {}]   ;;  %s2647_s7 = inlined_call_operand.vmem [shape: f32[64,1], index: 7, kind: output, shape index: {}]  }
   0x1   :  { %v12_v0 = vstv %s2646_s6 }
   0x2   :  { %13 = vst [vmem:[#allocation6] sm:$0x1] %v12_v0 }
   0x3   :  { %14 = vsyncpa [#allocation8], 0  ;;  %s2130_s26 = smov [#allocation7]   ;;  %s2106_s30 = scalar_lea.hbm %s2641_s1, 1024 }
   0x4   :  { %s22_s27 = sshll.u32 %s2130_s26, 4  ;;  %p2107_p0 = scmp.ne.s32.totalorder %s2641_s1, %s2106_s30  ;;  %s23_s27 = int_to_ptr.vmem [resolvable:$true] %s22_s27 }
   0x5   :  { %p2110_p1 = scmp.lt.u32.totalorder %s2106_s30, %s2641_s1 }
   0x7   :  { %p2112_p2 = pnand %p2110_p1, %p2107_p0 }
   0x9   :  { %2115 = shalt.err (!%p2112_p2)
}
   0xa   :  { %s2116_s6 = scalar_lea.vmem %s23_s27, 1024  ;;  %p2121_p4 = scmp.lt.s32.totalorder %s23_s27, %s23_s27 }
   0xb   :  { %p2117_p3 = scmp.ne.s32.totalorder %s23_s27, %s2116_s6  ;;  %p2122_p5 = scmp.lt.s32.totalorder %s2116_s6, %s2116_s6 }
   0xd   :  { %p2123_p6 = por %p2122_p5, %p2121_p4 }
   0xf   :  { %p2124_p7 = pnand %p2123_p6, %p2117_p3 }
  0x11   :  { %2127 = shalt.err (!%p2124_p7)
}
  0x12   :  { %s2131_s12 = smov 256   ;;  %s2132_s13 = smov 16  }
  0x13   :  { %28 = dma.hbm_to_vmem [thread:$0]  %s2641_s1, 1024, %s23_s27, [#allocation8], %s2131_s12, %s2131_s12, %s2132_s13  }
  0x14   :  { %2128 = dma.done.wait [#allocation8], 1024  }
  0x15   :  { %2129 = vsyncadd [#allocation8], 4294966272  ;;  %v2133_v1 = vmov 0.0   ;;  %v51_v2 = vld [vmem:[#allocation7 + $0x8] sm:$0xff]  ;;  %v53_v3 = vld [vmem:[#allocation7 + $0x18] sm:$0xff]  ;;  %vm70_vm0 = vcmask 261120   ;;  %v60_v43 = vlaneseq }
  0x16   :  { %183 = vmatprep.mubr.f32.mxu1 %v2133_v1  ;;  %159 = vmatprep.mubr.f32.mxu0 %v2133_v1  ;;  %v50_v4 = vld [vmem:[#allocation7] sm:$0xff]  ;;  %v1808_v5 = vpack.c.bf16 %v53_v3, %v51_v2  ;;  %v52_v6 = vld [vmem:[#allocation7 + $0x10] sm:$0xff]  ;;  %v55_v7 = vld [vmem:[#allocation7 + $0x28] sm:$0xff]  ;;  %s2135_s10 = smov 32   ;;  %vm240_vm1 = vcmask 523264   ;;  %vm1682_vm2 = vcmask 7168  }
  0x17   :  { %v57_v8 = vld [vmem:[#allocation7 + $0x38] sm:$0xff]  ;;  %v1810_v9 = vpack.c.bf16 %v52_v6, %v50_v4  ;;  %v54_v11 = vld [vmem:[#allocation7 + $0x20] sm:$0xff]  ;;  %v56_v12 = vld [vmem:[#allocation7 + $0x30] sm:$0xff]  ;;  %v61_v48 = vshrl.u32 %v60_v43, 7 }
  0x18   :  { %v1812_v10 = vpack.c.bf16 %v57_v8, %v55_v7  ;;  %1960 = vmatprep.subr.bf16.mxu1 %v1808_v5  ;;  %v225_v13 = vld [vmem:[%s2643_s3 + $0x8] sm:$0xff]  ;;  %v227_v14 = vld [vmem:[%s2643_s3 + $0x18] sm:$0xff]  ;;  %1809 = vmatprep.subr.bf16.mxu0 %v1808_v5  ;;  %v1814_v15 = vpack.c.bf16 %v56_v12, %v54_v11  ;;  %v224_v17 = vld [vmem:[%s2643_s3] sm:$0xff] }
  0x19   :  { %1962 = vmatpush1.bf16.msra.mxu1 %v1810_v9  ;;  %1811 = vmatpush1.bf16.msra.mxu0 %v1810_v9  ;;  %v2199_v16 = vpack.c.bf16 %v227_v14, %v225_v13  ;;  %v226_v18 = vld [vmem:[%s2643_s3 + $0x10] sm:$0xff]  ;;  %v229_v19 = vld [vmem:[%s2643_s3 + $0x28] sm:$0xff]  ;;  %v231_v20 = vld [vmem:[%s2643_s3 + $0x38] sm:$0xff]  ;;  %v62_v51 = vsub.s32 0, %v61_v48  ;;  %v66_v55 = vsub.s32 1, %v61_v48 }
  0x1a   :  { %1961 = vmatprep.subr.bf16.mxu1 %v1812_v10  ;;  %1813 = vmatprep.subr.bf16.mxu0 %v1812_v10  ;;  %v46_v21 = vld [vmem:[%s2640_s0 + $0x20] sm:$0xff]  ;;  %v2216_v22 = vpack.c.bf16 %v226_v18, %v224_v17  ;;  %v2219_v23 = vpack.c.bf16 %v231_v20, %v229_v19  ;;  %v230_v25 = vld [vmem:[%s2643_s3 + $0x30] sm:$0xff]  ;;  %v233_v27 = vld [vmem:[%s2643_s3 + $0x48] sm:$0xff] }
  0x1b   :  { %v228_v24 = vld [vmem:[%s2643_s3 + $0x20] sm:$0xff]  ;;  %v235_v28 = vld [vmem:[%s2643_s3 + $0x58] sm:$0xff]  ;;  %v47_v29 = vld [vmem:[%s2640_s0 + $0x28] sm:$0xff] }
  0x1c   :  { %v42_v26 = vld [vmem:[%s2640_s0] sm:$0xff]  ;;  %v2244_v30 = vpack.c.bf16 %v230_v25, %v228_v24  ;;  %v2247_v31 = vpack.c.bf16 %v235_v28, %v233_v27  ;;  %v234_v33 = vld [vmem:[%s2643_s3 + $0x50] sm:$0xff]  ;;  %v237_v34 = vld [vmem:[%s2643_s3 + $0x68] sm:$0xff] }
  0x1d   :  { %1963 = vmatpush1.bf16.msra.mxu1 %v1814_v15  ;;  %1815 = vmatpush1.bf16.msra.mxu0 %v1814_v15  ;;  %v232_v32 = vld [vmem:[%s2643_s3 + $0x40] sm:$0xff]  ;;  %v239_v35 = vld [vmem:[%s2643_s3 + $0x78] sm:$0xff]  ;;  %v48_v36 = vld [vmem:[%s2640_s0 + $0x30] sm:$0xff] }
  0x1e   :  { %1817 = vmatprep.subr.bf16.mxu1 %v2199_v16  ;;  %1849 = vmatprep.subr.bf16.mxu0 %v2199_v16  ;;  %v2270_v37 = vpack.c.bf16 %v234_v33, %v232_v32  ;;  %v2273_v38 = vpack.c.bf16 %v239_v35, %v237_v34  ;;  %v236_v39 = vld [vmem:[%s2643_s3 + $0x60] sm:$0xff]  ;;  %v238_v40 = vld [vmem:[%s2643_s3 + $0x70] sm:$0xff]  ;;  %v49_v41 = vld [vmem:[%s2640_s0 + $0x38] sm:$0xff] }
  0x1f   :  { %v2289_v42 = vpack.c.bf16 %v238_v40, %v236_v39  ;;  %v58_v52 = vld [vmem:[%s2642_s2] sm:$0x3]  ;;  %s2134_s2 = smov 64   ;;  %v43_v28 = vld [vmem:[%s2640_s0 + $0x8] sm:$0xff] }
  0x20   :  { %1700 = vmatmul.mubr.msk.f32.vlgmr.msra.gmra.mrb[0].mxu1 %vm70_vm0, %v46_v21  ;;  %1696 = vmatmul.mubr.msk.f32.vlgmr.msra.gmra.mrb[0].mxu0 %vm70_vm0, %v42_v26  ;;  %v2327_v56 = vrot.slane %v58_v52, %v62_v51  ;;  %v2332_v60 = vrot.slane %v58_v52, %v66_v55 }
  0x21   :  { %1819 = vmatpush1.bf16.msra.mxu1 %v2216_v22  ;;  %189 = vmatprep.mubr.f32.mxu1 %v2133_v1 }
  0x22   :  { %1821 = vmatprep.subr.bf16.mxu1 %v2219_v23  ;;  %165 = vmatprep.mubr.f32.mxu0 %v2133_v1 }
  0x23   :  { %1851 = vmatpush1.bf16.msra.mxu0 %v2216_v22 }
  0x24   :  { %1701 = vmatmul.mubr.msk.f32.gmra.mrb[2].mxu1 %vm70_vm0, %v47_v29  ;;  %1853 = vmatprep.subr.bf16.mxu0 %v2219_v23 }
  0x25   :  { %1823 = vmatpush1.bf16.msra.mxu1 %v2244_v30  ;;  %195 = vmatprep.mubr.f32.mxu1 %v2133_v1 }
  0x26   :  { %1825 = vmatprep.subr.bf16.mxu1 %v2247_v31  ;;  %1697 = vmatmul.mubr.msk.f32.gmra.mrb[2].mxu0 %vm70_vm0, %v43_v28 }
  0x27   :  { %1855 = vmatpush1.bf16.msra.mxu0 %v2244_v30  ;;  %171 = vmatprep.mubr.f32.mxu0 %v2133_v1 }
  0x28   :  { %1702 = vmatmul.mubr.msk.f32.gmra.mrb[4].mxu1 %vm70_vm0, %v48_v36  ;;  %1857 = vmatprep.subr.bf16.mxu0 %v2247_v31 }
  0x29   :  { %1827 = vmatpush1.bf16.msra.mxu1 %v2270_v37  ;;  %201 = vmatprep.mubr.f32.mxu1 %v2133_v1 }
  0x2a   :  { %1829 = vmatprep.subr.bf16.mxu1 %v2273_v38 }
  0x2b   :  { %1859 = vmatpush1.bf16.msra.mxu0 %v2270_v37 }
  0x2c   :  { %1703 = vmatmul.mubr.msk.f32.gmra.mrb[6].mxu1 %vm70_vm0, %v49_v41  ;;  %1861 = vmatprep.subr.bf16.mxu0 %v2273_v38 }
  0x2d   :  { %1831 = vmatpush1.bf16.msra.mxu1 %v2289_v42  ;;  %308 = vmatprep.mubr.f32.mxu1 %v2133_v1 }
  0x2e   :  { %1833 = vmatprep.subr.bf16.mxu1 %v2199_v16 }
  0x2f   :  { %1863 = vmatpush1.bf16.msra.mxu0 %v2289_v42 }
  0x30   :  { %309 = vmatmul.mubr.f32.vlgmr.msra.gmra.mrb[8].mxu1 %v2133_v1  ;;  %1881 = vmatprep.subr.bf16.mxu0 %v2199_v16 }
  0x31   :  { %1835 = vmatpush1.bf16.msra.mxu1 %v2216_v22  ;;  %450 = vmatprep.mubr.f32.mxu1 %v2133_v1 }
  0x32   :  { %1837 = vmatprep.subr.bf16.mxu1 %v2219_v23 }
  0x35   :  { %1839 = vmatpush1.bf16.msra.mxu1 %v2244_v30 }
  0x36   :  { %1841 = vmatprep.subr.bf16.mxu1 %v2247_v31 }
  0x39   :  { %1843 = vmatpush1.bf16.msra.mxu1 %v2270_v37 }
  0x3a   :  { %1845 = vmatprep.subr.bf16.mxu1 %v2273_v38 }
  0x3d   :  { %1847 = vmatpush1.bf16.msra.mxu1 %v2289_v42 }
  0x3e   :  { %1865 = vmatprep.subr.bf16.mxu1 %v2199_v16 }
  0xf3   :  { %v2310_v44 = vpop.f32.mrb[0].mxu1  ;;  %v161_v45 = vpop.f32.mrb[0].mxu0 }
  0xf4   :  { %v2312_v46 = vpop.f32.mrb[1].mxu1  ;;  %v2314_v47 = vpop.f32.mrb[1].mxu0  ;;  %v162_v59 = vadd.f32 %v161_v45, %v2327_v56 }
  0xf7   :  { %v2316_v49 = vpop.f32.mrb[2].mxu1 }
  0xf8   :  { %v2318_v50 = vpop.f32.mrb[3].mxu1 }
  0xf9   :  { %v167_v40 = vpop.f32.mrb[2].mxu0 }
  0xfa   :  { %v2369_v41 = vpop.f32.mrb[3].mxu0  ;;  %v168_v43 = vadd.f32 %v167_v40, %v2327_v56 }
  0xfb   :  { %v2323_v53 = vpop.f32.mrb[4].mxu1 }
  0xfc   :  { %v2325_v54 = vpop.f32.mrb[5].mxu1 }
  0xfd   :  { %v200_v45 = vadd.f32 %v2325_v54, %v2332_v60 }
  0xff   :  { %v2329_v57 = vpop.f32.mrb[6].mxu1 }
 0x100   :  { %v205_v58 = vpop.f32.mrb[7].mxu1 }
 0x101   :  { %v206_v61 = vadd.f32 %v205_v58, %v2332_v60 }
 0x103   :  { %v310_v62 = vpop.f32.mrb[8].mxu1 }
 0x104   :  { %v316_v63 = vadd.f32 %v310_v62, %v162_v59  ;;  %v312_v0 = vpop.f32.mrb[9].mxu1 }
 0x105   :  { %v319_v2 = vadd.f32 %v312_v0, %v206_v61 }
 0x106   :  { %1978 = vtanh.f32 %v316_v63  ;;  %v1704_v5 = vmul.f32 -1.442695, %v316_v63 }
 0x107   :  { %1980 = vtanh.f32 %v319_v2  ;;  %v1705_v6 = vmul.f32 -1.442695, %v319_v2 }
 0x108   :  { %1982 = vpow2.f32 %v1704_v5 }
 0x109   :  { %1984 = vpow2.f32 %v1705_v6 }
 0x110   :  { %v1979_v3 = vpop.eup %1978 }
 0x111   :  { %336 = vrot.lane.b32.xlu0 %v1979_v3, %s2134_s2  ;;  %v1981_v4 = vpop.eup %1980 }
 0x112   :  { %v1983_v7 = vpop.eup %1982 }
 0x113   :  { %v323_v8 = vadd.f32 1.0, %v1983_v7  ;;  %v1985_v9 = vpop.eup %1984 }
 0x114   :  { %v330_v10 = vadd.f32 1.0, %v1985_v9 }
 0x115   :  { %347 = vrot.lane.b32.xlu0 %v1981_v4, %s2134_s2  ;;  %1986 = vrcp.f32 %v323_v8 }
 0x116   :  { %1988 = vrcp.f32 %v330_v10 }
 0x11f   :  { %v1987_v11 = vpop.eup %1986 }
 0x120   :  { %v1989_v14 = vpop.eup %1988  ;;  %v334_v18 = vmul.f32 0.0, %v1987_v11 }
 0x121   :  { %v345_v21 = vmul.f32 0.0, %v1989_v14 }
 0x183   :  { %v337_v12 = vpop.permute.xlu0 %336 }
 0x184   :  { %v339_v13 = vmul.f32 %v1987_v11, %v337_v12 }
 0x186   :  { %341 = vrot.lane.b32.xlu1 %v339_v13, %s2135_s10 }
 0x187   :  { %v348_v15 = vpop.permute.xlu0 %347 }
 0x188   :  { %v350_v17 = vmul.f32 %v1989_v14, %v348_v15  ;;  %v44_v15 = vld [vmem:[%s2640_s0 + $0x10] sm:$0xff] }
 0x189   :  { %1698 = vmatmul.mubr.msk.f32.gmra.mrb[4].mxu0 %vm70_vm0, %v44_v15 }
 0x18a   :  { %352 = vrot.lane.b32.xlu1 %v350_v17, %s2135_s10  ;;  %177 = vmatprep.mubr.f32.mxu0 %v2133_v1  ;;  %v45_v17 = vld [vmem:[%s2640_s0 + $0x18] sm:$0xff] }
 0x18d   :  { %1699 = vmatmul.mubr.msk.f32.gmra.mrb[6].mxu0 %vm70_vm0, %v45_v17 }
 0x18e   :  { %594 = vmatprep.mubr.f32.mxu0 %v2133_v1 }
 0x1f8   :  { %v342_v19 = vpop.permute.xlu1 %341 }
 0x1f9   :  { %v2339_v20 = vadd.f32 %v342_v19, %v334_v18 }
 0x1fb   :  { %1990 = vtanh.f32 %v2339_v20 }
 0x1fc   :  { %v353_v24 = vpop.permute.xlu1 %352 }
 0x1fd   :  { %v2342_v25 = vadd.f32 %v353_v24, %v345_v21 }
 0x1ff   :  { %1992 = vtanh.f32 %v2342_v25 }
 0x205   :  { %v1991_v26 = vpop.eup %1990 }
 0x206   :  { %358 = vrot.lane.b32.xlu0 %v1991_v26, %s2134_s2 }
 0x209   :  { %v1993_v27 = vpop.eup %1992 }
 0x20a   :  { %364 = vrot.lane.b32.xlu1 %v1993_v27, %s2134_s2 }
 0x25c   :  { %v173_v26 = vpop.f32.mrb[4].mxu0 }
 0x25d   :  { %v2403_v27 = vpop.f32.mrb[5].mxu0 }
 0x260   :  { %v2405_v28 = vpop.f32.mrb[6].mxu0 }
 0x278   :  { %v359_v29 = vpop.permute.xlu0 %358 }
 0x279   :  { %v361_v32 = vmul.f32 %v1987_v11, %v359_v29  ;;  %v2407_v29 = vpop.f32.mrb[7].mxu0 }
 0x27b   :  { %369 = vrot.lane.b32.xlu0 %v361_v32, %s2135_s10 }
 0x27c   :  { %v365_v33 = vpop.permute.xlu1 %364 }
 0x27d   :  { %v2353_v34 = vmul.f32 %v1989_v14, %v365_v33 }
 0x27f   :  { %379 = vrot.lane.b32.xlu1 %v2353_v34, %s2134_s2 }
 0x2ed   :  { %v370_v35 = vpop.permute.xlu0 %369 }
 0x2ee   :  { %372 = vst.msk [vmem:[#allocation4] sm:$0xff] %vm70_vm0, %v370_v35 }
 0x2f1   :  { %v380_v36 = vpop.permute.xlu1 %379 }
 0x2f2   :  { %v382_v39 = vsel %vm70_vm0, %v370_v35, %v380_v36  ;;  %v174_v36 = vadd.f32 %v173_v26, %v2327_v56 }
 0x2f3   :  { %1706 = vmatmul.mubr.msk.f32.vlgmr.msra.gmra.mrb[10].mxu1 %vm240_vm1, %v382_v39  ;;  %v194_v39 = vadd.f32 %v2318_v50, %v2332_v60 }
 0x2f4   :  { %1867 = vmatpush1.bf16.msra.mxu1 %v2216_v22  ;;  %738 = vmatprep.mubr.f32.mxu1 %v2133_v1 }
 0x2f5   :  { %1869 = vmatprep.subr.bf16.mxu1 %v2219_v23 }
 0x2f8   :  { %1871 = vmatpush1.bf16.msra.mxu1 %v2244_v30 }
 0x2f9   :  { %1873 = vmatprep.subr.bf16.mxu1 %v2247_v31 }
 0x2fc   :  { %1875 = vmatpush1.bf16.msra.mxu1 %v2270_v37 }
 0x2fd   :  { %1877 = vmatprep.subr.bf16.mxu1 %v2273_v38 }
 0x300   :  { %1879 = vmatpush1.bf16.msra.mxu1 %v2289_v42 }
 0x301   :  { %1897 = vmatprep.subr.bf16.mxu1 %v2199_v16 }
 0x3c6   :  { %v452_v48 = vpop.f32.mrb[10].mxu1 }
 0x3c7   :  { %v459_v51 = vadd.f32 %v452_v48, %v168_v43  ;;  %v454_v52 = vpop.f32.mrb[11].mxu1 }
 0x3c8   :  { %v462_v55 = vadd.f32 %v454_v52, %v200_v45 }
 0x3c9   :  { %1994 = vtanh.f32 %v459_v51  ;;  %v1707_v61 = vmul.f32 -1.442695, %v459_v51 }
 0x3ca   :  { %1996 = vtanh.f32 %v462_v55  ;;  %v1708_v62 = vmul.f32 -1.442695, %v462_v55 }
 0x3cb   :  { %1998 = vpow2.f32 %v1707_v61 }
 0x3cc   :  { %2000 = vpow2.f32 %v1708_v62 }
 0x3d3   :  { %v1995_v58 = vpop.eup %1994 }
 0x3d4   :  { %v1997_v59 = vpop.eup %1996  ;;  %479 = vrot.lane.b32.xlu0 %v1995_v58, %s2134_s2 }
 0x3d5   :  { %490 = vrot.lane.b32.xlu1 %v1997_v59, %s2134_s2  ;;  %v1999_v63 = vpop.eup %1998 }
 0x3d6   :  { %v2001_v0 = vpop.eup %2000  ;;  %v466_v2 = vadd.f32 1.0, %v1999_v63 }
 0x3d7   :  { %v473_v54 = vadd.f32 1.0, %v2001_v0 }
 0x3d8   :  { %2002 = vrcp.f32 %v466_v2 }
 0x3d9   :  { %2004 = vrcp.f32 %v473_v54 }
 0x3e2   :  { %v2003_v3 = vpop.eup %2002 }
 0x3e3   :  { %v2005_v5 = vpop.eup %2004  ;;  %v477_v9 = vmul.f32 %v2003_v3, %v2339_v20 }
 0x3e4   :  { %v488_v11 = vmul.f32 %v2005_v5, %v2342_v25 }
 0x446   :  { %v480_v4 = vpop.permute.xlu0 %479 }
 0x447   :  { %v482_v6 = vmul.f32 %v2003_v3, %v480_v4  ;;  %v491_v7 = vpop.permute.xlu1 %490 }
 0x448   :  { %v493_v8 = vmul.f32 %v2005_v5, %v491_v7 }
 0x449   :  { %484 = vrot.lane.b32.xlu0 %v482_v6, %s2135_s10 }
 0x44a   :  { %495 = vrot.lane.b32.xlu1 %v493_v8, %s2135_s10 }
 0x4bb   :  { %v485_v10 = vpop.permute.xlu0 %484 }
 0x4bc   :  { %v2380_v12 = vadd.f32 %v485_v10, %v477_v9  ;;  %v496_v13 = vpop.permute.xlu1 %495 }
 0x4bd   :  { %v2382_v14 = vadd.f32 %v496_v13, %v488_v11 }
 0x4be   :  { %2006 = vtanh.f32 %v2380_v12 }
 0x4bf   :  { %2008 = vtanh.f32 %v2382_v14 }
 0x4c8   :  { %v2007_v18 = vpop.eup %2006 }
 0x4c9   :  { %v2009_v19 = vpop.eup %2008  ;;  %501 = vrot.lane.b32.xlu0 %v2007_v18, %s2134_s2 }
 0x4ca   :  { %507 = vrot.lane.b32.xlu1 %v2009_v19, %s2134_s2 }
 0x53b   :  { %v502_v20 = vpop.permute.xlu0 %501 }
 0x53c   :  { %v504_v21 = vmul.f32 %v2003_v3, %v502_v20  ;;  %v508_v24 = vpop.permute.xlu1 %507 }
 0x53d   :  { %v2398_v25 = vmul.f32 %v2005_v5, %v508_v24  ;;  %v188_v24 = vadd.f32 %v2312_v46, %v2332_v60 }
 0x53e   :  { %512 = vrot.lane.b32.xlu0 %v504_v21, %s2135_s10  ;;  %v180_v21 = vadd.f32 %v2405_v28, %v2327_v56 }
 0x53f   :  { %523 = vrot.lane.b32.xlu1 %v2398_v25, %s2134_s2 }
 0x5b0   :  { %v513_v32 = vpop.permute.xlu0 %512 }
 0x5b1   :  { %516 = vst.msk [vmem:[#allocation4 + $0x8] sm:$0xff] %vm70_vm0, %v513_v32  ;;  %v524_v33 = vpop.permute.xlu1 %523 }
 0x5b2   :  { %v526_v35 = vsel %vm70_vm0, %v513_v32, %v524_v33 }
 0x5b3   :  { %1709 = vmatmul.mubr.msk.f32.vlgmr.msra.gmra.mrb[8].mxu0 %vm240_vm1, %v526_v35 }
 0x5b4   :  { %1883 = vmatpush1.bf16.msra.mxu0 %v2216_v22  ;;  %882 = vmatprep.mubr.f32.mxu0 %v2133_v1 }
 0x5b5   :  { %1885 = vmatprep.subr.bf16.mxu0 %v2219_v23 }
 0x5b8   :  { %1887 = vmatpush1.bf16.msra.mxu0 %v2244_v30 }
 0x5b9   :  { %1889 = vmatprep.subr.bf16.mxu0 %v2247_v31 }
 0x5bc   :  { %1891 = vmatpush1.bf16.msra.mxu0 %v2270_v37 }
 0x5bd   :  { %1893 = vmatprep.subr.bf16.mxu0 %v2273_v38 }
 0x5c0   :  { %1895 = vmatpush1.bf16.msra.mxu0 %v2289_v42 }
 0x5c1   :  { %1913 = vmatprep.subr.bf16.mxu0 %v2199_v16 }
 0x686   :  { %v596_v40 = vpop.f32.mrb[8].mxu0 }
 0x687   :  { %v603_v43 = vadd.f32 %v596_v40, %v174_v36  ;;  %v598_v45 = vpop.f32.mrb[9].mxu0 }
 0x688   :  { %v606_v48 = vadd.f32 %v598_v45, %v194_v39 }
 0x689   :  { %2010 = vtanh.f32 %v603_v43  ;;  %v1710_v55 = vmul.f32 -1.442695, %v603_v43 }
 0x68a   :  { %2012 = vtanh.f32 %v606_v48  ;;  %v1711_v58 = vmul.f32 -1.442695, %v606_v48 }
 0x68b   :  { %2014 = vpow2.f32 %v1710_v55 }
 0x68c   :  { %2016 = vpow2.f32 %v1711_v58 }
 0x693   :  { %v2011_v51 = vpop.eup %2010 }
 0x694   :  { %v2013_v52 = vpop.eup %2012  ;;  %623 = vrot.lane.b32.xlu0 %v2011_v51, %s2134_s2 }
 0x695   :  { %634 = vrot.lane.b32.xlu1 %v2013_v52, %s2134_s2  ;;  %v2015_v59 = vpop.eup %2014 }
 0x696   :  { %v2017_v61 = vpop.eup %2016  ;;  %v610_v62 = vadd.f32 1.0, %v2015_v59 }
 0x697   :  { %v617_v50 = vadd.f32 1.0, %v2017_v61 }
 0x698   :  { %2018 = vrcp.f32 %v610_v62 }
 0x699   :  { %2020 = vrcp.f32 %v617_v50 }
 0x6a2   :  { %v2019_v63 = vpop.eup %2018 }
 0x6a3   :  { %v2021_v2 = vpop.eup %2020  ;;  %v621_v5 = vmul.f32 %v2019_v63, %v2380_v12 }
 0x6a4   :  { %v632_v7 = vmul.f32 %v2021_v2, %v2382_v14 }
 0x706   :  { %v624_v0 = vpop.permute.xlu0 %623 }
 0x707   :  { %v626_v54 = vmul.f32 %v2019_v63, %v624_v0  ;;  %v635_v3 = vpop.permute.xlu1 %634 }
 0x708   :  { %v637_v4 = vmul.f32 %v2021_v2, %v635_v3 }
 0x709   :  { %628 = vrot.lane.b32.xlu0 %v626_v54, %s2135_s10 }
 0x70a   :  { %639 = vrot.lane.b32.xlu1 %v637_v4, %s2135_s10 }
 0x77b   :  { %v629_v6 = vpop.permute.xlu0 %628 }
 0x77c   :  { %v631_v8 = vadd.f32 %v629_v6, %v621_v5  ;;  %v640_v9 = vpop.permute.xlu1 %639 }
 0x77d   :  { %v642_v10 = vadd.f32 %v640_v9, %v632_v7 }
 0x77e   :  { %2022 = vtanh.f32 %v631_v8 }
 0x77f   :  { %2024 = vtanh.f32 %v642_v10 }
 0x788   :  { %v2023_v11 = vpop.eup %2022 }
 0x789   :  { %v2025_v13 = vpop.eup %2024  ;;  %645 = vrot.lane.b32.xlu0 %v2023_v11, %s2134_s2  ;;  %v186_v11 = vadd.f32 %v2310_v44, %v2327_v56 }
 0x78a   :  { %651 = vrot.lane.b32.xlu1 %v2025_v13, %s2134_s2  ;;  %v182_v13 = vadd.f32 %v2407_v29, %v2332_v60 }
 0x7fb   :  { %v646_v15 = vpop.permute.xlu0 %645 }
 0x7fc   :  { %v648_v17 = vmul.f32 %v2019_v63, %v646_v15  ;;  %v652_v18 = vpop.permute.xlu1 %651 }
 0x7fd   :  { %v2432_v19 = vmul.f32 %v2021_v2, %v652_v18 }
 0x7fe   :  { %656 = vrot.lane.b32.xlu0 %v648_v17, %s2135_s10 }
 0x7ff   :  { %667 = vrot.lane.b32.xlu1 %v2432_v19, %s2134_s2 }
 0x870   :  { %v657_v12 = vpop.permute.xlu0 %656 }
 0x871   :  { %660 = vst.msk [vmem:[#allocation4 + $0x10] sm:$0xff] %vm70_vm0, %v657_v12  ;;  %v668_v14 = vpop.permute.xlu1 %667 }
 0x872   :  { %v670_v20 = vsel %vm70_vm0, %v657_v12, %v668_v14 }
 0x873   :  { %1712 = vmatmul.mubr.msk.f32.vlgmr.msra.gmra.mrb[12].mxu1 %vm240_vm1, %v670_v20 }
 0x874   :  { %1899 = vmatpush1.bf16.msra.mxu1 %v2216_v22  ;;  %1026 = vmatprep.mubr.f32.mxu1 %v2133_v1 }
 0x875   :  { %1901 = vmatprep.subr.bf16.mxu1 %v2219_v23 }
 0x878   :  { %1903 = vmatpush1.bf16.msra.mxu1 %v2244_v30 }
 0x879   :  { %1905 = vmatprep.subr.bf16.mxu1 %v2247_v31 }
 0x87c   :  { %1907 = vmatpush1.bf16.msra.mxu1 %v2270_v37 }
 0x87d   :  { %1909 = vmatprep.subr.bf16.mxu1 %v2273_v38 }
 0x880   :  { %1911 = vmatpush1.bf16.msra.mxu1 %v2289_v42 }
 0x881   :  { %1929 = vmatprep.subr.bf16.mxu1 %v2199_v16 }
 0x946   :  { %v740_v26 = vpop.f32.mrb[12].mxu1 }
 0x947   :  { %v747_v32 = vadd.f32 %v740_v26, %v180_v21  ;;  %v742_v33 = vpop.f32.mrb[13].mxu1 }
 0x948   :  { %v750_v35 = vadd.f32 %v742_v33, %v188_v24 }
 0x949   :  { %2026 = vtanh.f32 %v747_v32  ;;  %v1713_v40 = vmul.f32 -1.442695, %v747_v32 }
 0x94a   :  { %2028 = vtanh.f32 %v750_v35  ;;  %v1714_v16 = vmul.f32 -1.442695, %v750_v35 }
 0x94b   :  { %2030 = vpow2.f32 %v1713_v40 }
 0x94c   :  { %2032 = vpow2.f32 %v1714_v16 }
 0x953   :  { %v2027_v36 = vpop.eup %2026 }
 0x954   :  { %v2029_v39 = vpop.eup %2028  ;;  %767 = vrot.lane.b32.xlu0 %v2027_v36, %s2134_s2 }
 0x955   :  { %778 = vrot.lane.b32.xlu1 %v2029_v39, %s2134_s2  ;;  %v2031_v28 = vpop.eup %2030 }
 0x956   :  { %v2033_v43 = vpop.eup %2032  ;;  %v754_v45 = vadd.f32 1.0, %v2031_v28 }
 0x957   :  { %v761_v46 = vadd.f32 1.0, %v2033_v43 }
 0x958   :  { %2034 = vrcp.f32 %v754_v45 }
 0x959   :  { %2036 = vrcp.f32 %v761_v46 }
 0x962   :  { %v2035_v48 = vpop.eup %2034 }
 0x963   :  { %v2037_v52 = vpop.eup %2036  ;;  %v765_v61 = vmul.f32 %v2035_v48, %v631_v8 }
 0x964   :  { %v776_v50 = vmul.f32 %v2037_v52, %v642_v10 }
 0x9c6   :  { %v768_v51 = vpop.permute.xlu0 %767 }
 0x9c7   :  { %v770_v55 = vmul.f32 %v2035_v48, %v768_v51  ;;  %v779_v58 = vpop.permute.xlu1 %778 }
 0x9c8   :  { %v781_v59 = vmul.f32 %v2037_v52, %v779_v58 }
 0x9c9   :  { %772 = vrot.lane.b32.xlu0 %v770_v55, %s2135_s10 }
 0x9ca   :  { %783 = vrot.lane.b32.xlu1 %v781_v59, %s2135_s10 }
 0xa3b   :  { %v773_v62 = vpop.permute.xlu0 %772 }
 0xa3c   :  { %v775_v63 = vadd.f32 %v773_v62, %v765_v61  ;;  %v784_v0 = vpop.permute.xlu1 %783 }
 0xa3d   :  { %v786_v2 = vadd.f32 %v784_v0, %v776_v50 }
 0xa3e   :  { %2038 = vtanh.f32 %v775_v63 }
 0xa3f   :  { %2040 = vtanh.f32 %v786_v2 }
 0xa48   :  { %v2039_v54 = vpop.eup %2038 }
 0xa49   :  { %v2041_v3 = vpop.eup %2040  ;;  %789 = vrot.lane.b32.xlu0 %v2039_v54, %s2134_s2 }
 0xa4a   :  { %795 = vrot.lane.b32.xlu1 %v2041_v3, %s2134_s2 }
 0xabb   :  { %v790_v4 = vpop.permute.xlu0 %789 }
 0xabc   :  { %v792_v5 = vmul.f32 %v2035_v48, %v790_v4  ;;  %v796_v6 = vpop.permute.xlu1 %795 }
 0xabd   :  { %v2459_v7 = vmul.f32 %v2037_v52, %v796_v6 }
 0xabe   :  { %800 = vrot.lane.b32.xlu0 %v792_v5, %s2135_s10 }
 0xabf   :  { %811 = vrot.lane.b32.xlu1 %v2459_v7, %s2134_s2 }
 0xb30   :  { %v801_v8 = vpop.permute.xlu0 %800 }
 0xb31   :  { %804 = vst.msk [vmem:[#allocation4 + $0x18] sm:$0xff] %vm70_vm0, %v801_v8  ;;  %v812_v9 = vpop.permute.xlu1 %811 }
 0xb32   :  { %v814_v10 = vsel %vm70_vm0, %v801_v8, %v812_v9 }
 0xb33   :  { %1715 = vmatmul.mubr.msk.f32.vlgmr.msra.gmra.mrb[10].mxu0 %vm240_vm1, %v814_v10 }
 0xb34   :  { %1915 = vmatpush1.bf16.msra.mxu0 %v2216_v22  ;;  %1170 = vmatprep.mubr.f32.mxu0 %v2133_v1 }
 0xb35   :  { %1917 = vmatprep.subr.bf16.mxu0 %v2219_v23 }
 0xb38   :  { %1919 = vmatpush1.bf16.msra.mxu0 %v2244_v30 }
 0xb39   :  { %1921 = vmatprep.subr.bf16.mxu0 %v2247_v31 }
 0xb3c   :  { %1923 = vmatpush1.bf16.msra.mxu0 %v2270_v37 }
 0xb3d   :  { %1925 = vmatprep.subr.bf16.mxu0 %v2273_v38 }
 0xb40   :  { %1927 = vmatpush1.bf16.msra.mxu0 %v2289_v42 }
 0xc06   :  { %v884_v15 = vpop.f32.mrb[10].mxu0 }
 0xc07   :  { %v891_v17 = vadd.f32 %v884_v15, %v186_v11  ;;  %v886_v18 = vpop.f32.mrb[11].mxu0 }
 0xc08   :  { %v894_v12 = vadd.f32 %v886_v18, %v182_v13 }
 0xc09   :  { %2042 = vtanh.f32 %v891_v17  ;;  %v1716_v21 = vmul.f32 -1.442695, %v891_v17 }
 0xc0a   :  { %2044 = vtanh.f32 %v894_v12  ;;  %v1717_v24 = vmul.f32 -1.442695, %v894_v12 }
 0xc0b   :  { %2046 = vpow2.f32 %v1716_v21 }
 0xc0c   :  { %2048 = vpow2.f32 %v1717_v24 }
 0xc13   :  { %v2043_v14 = vpop.eup %2042 }
 0xc14   :  { %v2045_v20 = vpop.eup %2044  ;;  %911 = vrot.lane.b32.xlu0 %v2043_v14, %s2134_s2 }
 0xc15   :  { %922 = vrot.lane.b32.xlu1 %v2045_v20, %s2134_s2  ;;  %v2047_v44 = vpop.eup %2046 }
 0xc16   :  { %v2049_v26 = vpop.eup %2048  ;;  %v898_v32 = vadd.f32 1.0, %v2047_v44 }
 0xc17   :  { %v905_v29 = vadd.f32 1.0, %v2049_v26 }
 0xc18   :  { %2050 = vrcp.f32 %v898_v32 }
 0xc19   :  { %2052 = vrcp.f32 %v905_v29 }
 0xc22   :  { %v2051_v33 = vpop.eup %2050 }
 0xc23   :  { %v2053_v36 = vpop.eup %2052  ;;  %v909_v28 = vmul.f32 %v2051_v33, %v775_v63 }
 0xc24   :  { %v920_v45 = vmul.f32 %v2053_v36, %v786_v2  ;;  %v192_v2 = vadd.f32 %v2316_v49, %v2327_v56 }
 0xc86   :  { %v912_v35 = vpop.permute.xlu0 %911 }
 0xc87   :  { %v914_v39 = vmul.f32 %v2051_v33, %v912_v35  ;;  %v923_v40 = vpop.permute.xlu1 %922 }
 0xc88   :  { %v925_v16 = vmul.f32 %v2053_v36, %v923_v40 }
 0xc89   :  { %916 = vrot.lane.b32.xlu0 %v914_v39, %s2135_s10  ;;  %v170_v39 = vadd.f32 %v2369_v41, %v2332_v60 }
 0xc8a   :  { %927 = vrot.lane.b32.xlu1 %v925_v16, %s2135_s10 }
 0xcfb   :  { %v917_v43 = vpop.permute.xlu0 %916 }
 0xcfc   :  { %v919_v46 = vadd.f32 %v917_v43, %v909_v28  ;;  %v928_v48 = vpop.permute.xlu1 %927 }
 0xcfd   :  { %v930_v51 = vadd.f32 %v928_v48, %v920_v45 }
 0xcfe   :  { %2054 = vtanh.f32 %v919_v46 }
 0xcff   :  { %2056 = vtanh.f32 %v930_v51 }
 0xd08   :  { %v2055_v52 = vpop.eup %2054 }
 0xd09   :  { %v2057_v55 = vpop.eup %2056  ;;  %933 = vrot.lane.b32.xlu0 %v2055_v52, %s2134_s2 }
 0xd0a   :  { %939 = vrot.lane.b32.xlu1 %v2057_v55, %s2134_s2 }
 0xd7b   :  { %v934_v58 = vpop.permute.xlu0 %933 }
 0xd7c   :  { %v936_v59 = vmul.f32 %v2051_v33, %v934_v58  ;;  %v940_v61 = vpop.permute.xlu1 %939 }
 0xd7d   :  { %v2485_v62 = vmul.f32 %v2053_v36, %v940_v61  ;;  %v198_v36 = vadd.f32 %v2323_v53, %v2327_v56 }
 0xd7e   :  { %944 = vrot.lane.b32.xlu0 %v936_v59, %s2135_s10 }
 0xd7f   :  { %955 = vrot.lane.b32.xlu1 %v2485_v62, %s2134_s2 }
 0xdf0   :  { %v945_v50 = vpop.permute.xlu0 %944 }
 0xdf1   :  { %948 = vst.msk [vmem:[#allocation4 + $0x20] sm:$0xff] %vm70_vm0, %v945_v50  ;;  %v956_v63 = vpop.permute.xlu1 %955 }
 0xdf2   :  { %v958_v0 = vsel %vm70_vm0, %v945_v50, %v956_v63 }
 0xdf3   :  { %1718 = vmatmul.mubr.msk.f32.vlgmr.msra.gmra.mrb[14].mxu1 %vm240_vm1, %v958_v0 }
 0xdf4   :  { %1931 = vmatpush1.bf16.msra.mxu1 %v2216_v22  ;;  %1314 = vmatprep.mubr.f32.mxu1 %v2133_v1  ;;  %v176_v22 = vadd.f32 %v2403_v27, %v2332_v60 }
 0xdf5   :  { %1933 = vmatprep.subr.bf16.mxu1 %v2219_v23 }
 0xdf8   :  { %1935 = vmatpush1.bf16.msra.mxu1 %v2244_v30 }
 0xdf9   :  { %1937 = vmatprep.subr.bf16.mxu1 %v2247_v31 }
 0xdfc   :  { %1939 = vmatpush1.bf16.msra.mxu1 %v2270_v37 }
 0xdfd   :  { %1941 = vmatprep.subr.bf16.mxu1 %v2273_v38 }
 0xe00   :  { %1943 = vmatpush1.bf16.msra.mxu1 %v2289_v42 }
 0xec6   :  { %v1028_v54 = vpop.f32.mrb[14].mxu1 }
 0xec7   :  { %v1035_v1 = vadd.f32 %v1028_v54, %v192_v2  ;;  %v1030_v3 = vpop.f32.mrb[15].mxu1 }
 0xec8   :  { %v1038_v23 = vadd.f32 %v1030_v3, %v176_v22 }
 0xec9   :  { %2058 = vtanh.f32 %v1035_v1  ;;  %v1719_v37 = vmul.f32 -1.442695, %v1035_v1 }
 0xeca   :  { %2060 = vtanh.f32 %v1038_v23  ;;  %v1720_v38 = vmul.f32 -1.442695, %v1038_v23 }
 0xecb   :  { %2062 = vpow2.f32 %v1719_v37 }
 0xecc   :  { %2064 = vpow2.f32 %v1720_v38 }
 0xed3   :  { %v2059_v30 = vpop.eup %2058 }
 0xed4   :  { %v2061_v31 = vpop.eup %2060  ;;  %1055 = vrot.lane.b32.xlu0 %v2059_v30, %s2134_s2 }
 0xed5   :  { %1066 = vrot.lane.b32.xlu1 %v2061_v31, %s2134_s2  ;;  %v2063_v42 = vpop.eup %2062 }
 0xed6   :  { %v2065_v49 = vpop.eup %2064  ;;  %v1042_v4 = vadd.f32 1.0, %v2063_v42 }
 0xed7   :  { %v1049_v27 = vadd.f32 1.0, %v2065_v49 }
 0xed8   :  { %2066 = vrcp.f32 %v1042_v4 }
 0xed9   :  { %2068 = vrcp.f32 %v1049_v27 }
 0xee2   :  { %v2067_v5 = vpop.eup %2066 }
 0xee3   :  { %v2069_v8 = vpop.eup %2068  ;;  %v1053_v13 = vmul.f32 %v2067_v5, %v919_v46 }
 0xee4   :  { %v1064_v17 = vmul.f32 %v2069_v8, %v930_v51 }
 0xf46   :  { %v1056_v6 = vpop.permute.xlu0 %1055 }
 0xf47   :  { %v1058_v9 = vmul.f32 %v2067_v5, %v1056_v6  ;;  %v1067_v10 = vpop.permute.xlu1 %1066  ;;  %v204_v6 = vadd.f32 %v2329_v57, %v2327_v56 }
 0xf48   :  { %v1069_v11 = vmul.f32 %v2069_v8, %v1067_v10 }
 0xf49   :  { %1060 = vrot.lane.b32.xlu0 %v1058_v9, %s2135_s10 }
 0xf4a   :  { %1071 = vrot.lane.b32.xlu1 %v1069_v11, %s2135_s10 }
 0xfbb   :  { %v1061_v15 = vpop.permute.xlu0 %1060 }
 0xfbc   :  { %v1063_v18 = vadd.f32 %v1061_v15, %v1053_v13  ;;  %v1072_v12 = vpop.permute.xlu1 %1071 }
 0xfbd   :  { %v1074_v14 = vadd.f32 %v1072_v12, %v1064_v17 }
 0xfbe   :  { %2070 = vtanh.f32 %v1063_v18 }
 0xfbf   :  { %2072 = vtanh.f32 %v1074_v14 }
 0xfc8   :  { %v2071_v20 = vpop.eup %2070 }
 0xfc9   :  { %v2073_v21 = vpop.eup %2072  ;;  %1077 = vrot.lane.b32.xlu0 %v2071_v20, %s2134_s2 }
 0xfca   :  { %1083 = vrot.lane.b32.xlu1 %v2073_v21, %s2134_s2 }
0x103b   :  { %v1078_v24 = vpop.permute.xlu0 %1077 }
0x103c   :  { %v1080_v44 = vmul.f32 %v2067_v5, %v1078_v24  ;;  %v1084_v26 = vpop.permute.xlu1 %1083 }
0x103d   :  { %v2511_v32 = vmul.f32 %v2069_v8, %v1084_v26  ;;  %v164_v8 = vadd.f32 %v2314_v47, %v2332_v60 }
0x103e   :  { %1088 = vrot.lane.b32.xlu0 %v1080_v44, %s2135_s10 }
0x103f   :  { %1099 = vrot.lane.b32.xlu1 %v2511_v32, %s2134_s2 }
0x10b0   :  { %v1089_v29 = vpop.permute.xlu0 %1088 }
0x10b1   :  { %1092 = vst.msk [vmem:[#allocation4 + $0x28] sm:$0xff] %vm70_vm0, %v1089_v29  ;;  %v1100_v33 = vpop.permute.xlu1 %1099 }
0x10b2   :  { %v1102_v35 = vsel %vm70_vm0, %v1089_v29, %v1100_v33 }
0x10b3   :  { %1721 = vmatmul.mubr.msk.f32.vlgmr.msra.gmra.mrb[12].mxu0 %vm240_vm1, %v1102_v35 }
0x1186   :  { %v1172_v40 = vpop.f32.mrb[12].mxu0 }
0x1187   :  { %v1179_v16 = vadd.f32 %v1172_v40, %v198_v36  ;;  %v1174_v28 = vpop.f32.mrb[13].mxu0 }
0x1188   :  { %v1182_v43 = vadd.f32 %v1174_v28, %v170_v39 }
0x1189   :  { %2074 = vtanh.f32 %v1179_v16  ;;  %v1722_v48 = vmul.f32 -1.442695, %v1179_v16 }
0x118a   :  { %2076 = vtanh.f32 %v1182_v43  ;;  %v1723_v51 = vmul.f32 -1.442695, %v1182_v43  ;;  %v1405_v43 = vld [vmem:[%s2645_s5] sm:$0xff] }
0x118b   :  { %2078 = vpow2.f32 %v1722_v48 }
0x118c   :  { %2080 = vpow2.f32 %v1723_v51  ;;  %v1393_v51 = vld [vmem:[%s2644_s4] sm:$0xff] }
0x1193   :  { %v2075_v45 = vpop.eup %2074 }
0x1194   :  { %v2077_v46 = vpop.eup %2076  ;;  %1199 = vrot.lane.b32.xlu0 %v2075_v45, %s2134_s2  ;;  %v1406_v45 = vld [vmem:[%s2645_s5 + $0x8] sm:$0xff] }
0x1195   :  { %1210 = vrot.lane.b32.xlu1 %v2077_v46, %s2134_s2  ;;  %v2079_v53 = vpop.eup %2078  ;;  %v1944_v46 = vpack.c.bf16 %v1406_v45, %v1405_v43 }
0x1196   :  { %v2081_v52 = vpop.eup %2080  ;;  %v1186_v55 = vadd.f32 1.0, %v2079_v53  ;;  %v1394_v53 = vld [vmem:[%s2644_s4 + $0x8] sm:$0xff] }
0x1197   :  { %v1193_v41 = vadd.f32 1.0, %v2081_v52  ;;  %1945 = vmatprep.subr.bf16.mxu0 %v1944_v46 }
0x1198   :  { %2082 = vrcp.f32 %v1186_v55  ;;  %1947 = vmatpush3.bf16.msra.mxu0 %v1944_v46  ;;  %v1952_v55 = vpack.c.bf16 %v1394_v53, %v1393_v51 }
0x1199   :  { %2084 = vrcp.f32 %v1193_v41 }
0x11a2   :  { %v2083_v58 = vpop.eup %2082 }
0x11a3   :  { %v2085_v61 = vpop.eup %2084  ;;  %v1197_v2 = vmul.f32 %v2083_v58, %v1063_v18 }
0x11a4   :  { %v1208_v54 = vmul.f32 %v2085_v61, %v1074_v14 }
0x1206   :  { %v1200_v59 = vpop.permute.xlu0 %1199 }
0x1207   :  { %v1202_v50 = vmul.f32 %v2083_v58, %v1200_v59  ;;  %v1211_v63 = vpop.permute.xlu1 %1210 }
0x1208   :  { %v1213_v0 = vmul.f32 %v2085_v61, %v1211_v63 }
0x1209   :  { %1204 = vrot.lane.b32.xlu0 %v1202_v50, %s2135_s10 }
0x120a   :  { %1215 = vrot.lane.b32.xlu1 %v1213_v0, %s2135_s10 }
0x127b   :  { %v1205_v22 = vpop.permute.xlu0 %1204 }
0x127c   :  { %v1207_v1 = vadd.f32 %v1205_v22, %v1197_v2  ;;  %v1216_v3 = vpop.permute.xlu1 %1215  ;;  %v1396_v2 = vld [vmem:[%s2644_s4 + $0x18] sm:$0xff] }
0x127d   :  { %v1218_v23 = vadd.f32 %v1216_v3, %v1208_v54 }
0x127e   :  { %2086 = vtanh.f32 %v1207_v1 }
0x127f   :  { %2088 = vtanh.f32 %v1218_v23 }
0x1288   :  { %v2087_v30 = vpop.eup %2086 }
0x1289   :  { %v2089_v31 = vpop.eup %2088  ;;  %1221 = vrot.lane.b32.xlu0 %v2087_v30, %s2134_s2 }
0x128a   :  { %1227 = vrot.lane.b32.xlu1 %v2089_v31, %s2134_s2 }
0x12fb   :  { %v1222_v37 = vpop.permute.xlu0 %1221 }
0x12fc   :  { %v1224_v38 = vmul.f32 %v2083_v58, %v1222_v37  ;;  %v1228_v42 = vpop.permute.xlu1 %1227 }
0x12fd   :  { %v1230_v49 = vmul.f32 %v2085_v61, %v1228_v42 }
0x12fe   :  { %1232 = vrot.lane.b32.xlu0 %v1224_v38, %s2135_s10 }
0x12ff   :  { %1243 = vrot.lane.b32.xlu1 %v1230_v49, %s2134_s2 }
0x1370   :  { %v1233_v4 = vpop.permute.xlu0 %1232 }
0x1371   :  { %1236 = vst.msk [vmem:[#allocation4 + $0x30] sm:$0xff] %vm70_vm0, %v1233_v4  ;;  %v1244_v27 = vpop.permute.xlu1 %1243 }
0x1372   :  { %v1246_v5 = vsel %vm70_vm0, %v1233_v4, %v1244_v27  ;;  %v1385_v4 = vld [vmem:[#allocation4] sm:$0xff]  ;;  %v1386_v27 = vld [vmem:[#allocation4 + $0x8] sm:$0xff] }
0x1373   :  { %1724 = vmatmul.mubr.msk.f32.vlgmr.msra.gmra.mrb[16].mxu1 %vm240_vm1, %v1246_v5  ;;  %v1387_v5 = vld [vmem:[#allocation4 + $0x10] sm:$0xff] }
0x1446   :  { %v1316_v9 = vpop.f32.mrb[16].mxu1 }
0x1447   :  { %v1323_v10 = vadd.f32 %v1316_v9, %v204_v6  ;;  %v1318_v11 = vpop.f32.mrb[17].mxu1  ;;  %v1388_v6 = vld [vmem:[#allocation4 + $0x18] sm:$0xff]  ;;  %v1390_v9 = vld [vmem:[#allocation4 + $0x28] sm:$0xff] }
0x1448   :  { %v1325_v13 = vadd.f32 %v1318_v11, %v164_v8  ;;  %v1389_v8 = vld [vmem:[#allocation4 + $0x20] sm:$0xff] }
0x1449   :  { %2090 = vtanh.f32 %v1323_v10  ;;  %v1725_v18 = vmul.f32 -1.442695, %v1323_v10  ;;  %v1391_v10 = vld [vmem:[#allocation4 + $0x30] sm:$0xff] }
0x144a   :  { %2092 = vtanh.f32 %v1325_v13  ;;  %v1726_v12 = vmul.f32 -1.442695, %v1325_v13  ;;  %v1743_v13 = vld [vmem:[#allocation6] ss:$0 sm:$0xff] }
0x144b   :  { %2094 = vpow2.f32 %v1725_v18 }
0x144c   :  { %2096 = vpow2.f32 %v1726_v12 }
0x1453   :  { %v2091_v15 = vpop.eup %2090 }
0x1454   :  { %v2093_v17 = vpop.eup %2092  ;;  %1342 = vrot.lane.b32.xlu1 %v2091_v15, %s2134_s2 }
0x1455   :  { %1353 = vrot.lane.b32.xlu0 %v2093_v17, %s2134_s2  ;;  %v2095_v56 = vpop.eup %2094 }
0x1456   :  { %v2097_v57 = vpop.eup %2096  ;;  %v1329_v14 = vadd.f32 1.0, %v2095_v56 }
0x1457   :  { %v1336_v47 = vadd.f32 1.0, %v2097_v57 }
0x1458   :  { %2098 = vrcp.f32 %v1329_v14 }
0x1459   :  { %2100 = vrcp.f32 %v1336_v47 }
0x1462   :  { %v2099_v60 = vpop.eup %2098 }
0x1463   :  { %v2101_v21 = vpop.eup %2100  ;;  %v1340_v29 = vmul.f32 %v2099_v60, %v1207_v1 }
0x1464   :  { %v1351_v35 = vmul.f32 %v2101_v21, %v1218_v23 }
0x14c6   :  { %v1343_v20 = vpop.permute.xlu1 %1342 }
0x14c7   :  { %v1345_v24 = vmul.f32 %v2099_v60, %v1343_v20  ;;  %v1354_v44 = vpop.permute.xlu0 %1353 }
0x14c8   :  { %v1356_v26 = vmul.f32 %v2101_v21, %v1354_v44 }
0x14c9   :  { %1347 = vrot.lane.b32.xlu1 %v1345_v24, %s2135_s10 }
0x14ca   :  { %1358 = vrot.lane.b32.xlu0 %v1356_v26, %s2135_s10 }
0x153b   :  { %v1348_v33 = vpop.permute.xlu1 %1347 }
0x153c   :  { %v1350_v36 = vadd.f32 %v1348_v33, %v1340_v29  ;;  %v1359_v39 = vpop.permute.xlu0 %1358 }
0x153d   :  { %v1361_v40 = vadd.f32 %v1359_v39, %v1351_v35 }
0x153e   :  { %2102 = vtanh.f32 %v1350_v36 }
0x153f   :  { %2104 = vtanh.f32 %v1361_v40 }
0x1548   :  { %v2103_v16 = vpop.eup %2102 }
0x1549   :  { %v2105_v28 = vpop.eup %2104  ;;  %1364 = vrot.lane.b32.xlu1 %v2103_v16, %s2134_s2 }
0x154a   :  { %1370 = vrot.lane.b32.xlu0 %v2105_v28, %s2134_s2 }
0x154d   :  { %1238 = vrot.lane.b32.xlu1 %v1230_v49, %s2135_s10 }
0x1551   :  { %950 = vrot.lane.b32.xlu1 %v2485_v62, %s2135_s10  ;;  %v1407_v62 = vld [vmem:[%s2645_s5 + $0x10] sm:$0xff] }
0x1555   :  { %662 = vrot.lane.b32.xlu1 %v2432_v19, %s2135_s10  ;;  %v1408_v19 = vld [vmem:[%s2645_s5 + $0x18] sm:$0xff] }
0x1559   :  { %374 = vrot.lane.b32.xlu1 %v2353_v34, %s2135_s10  ;;  %v1948_v34 = vpack.c.bf16 %v1408_v19, %v1407_v62 }
0x155b   :  { %1949 = vmatprep.subr.bf16.mxu0 %v1948_v34 }
0x155c   :  { %1951 = vmatpush3.bf16.msra.mxu0 %v1948_v34 }
0x155d   :  { %1953 = vmatprep.subr.bf16.mxu0 %v1952_v55 }
0x15bb   :  { %v1365_v48 = vpop.permute.xlu1 %1364 }
0x15bc   :  { %v1371_v52 = vpop.permute.xlu0 %1370  ;;  %v1367_v63 = vmul.f32 %v2099_v60, %v1365_v48 }
0x15bd   :  { %v1373_v41 = vmul.f32 %v2101_v21, %v1371_v52 }
0x15bf   :  { %v1239_v58 = vpop.permute.xlu1 %1238  ;;  %1381 = vrot.lane.b32.xlu0 %v1373_v41, %s2135_s10 }
0x15c0   :  { %1242 = vst.msk [vmem:[#allocation5 + $0x8] sm:$0xff] %vm70_vm0, %v1239_v58 }
0x15c3   :  { %v951_v59 = vpop.permute.xlu1 %950  ;;  %1094 = vrot.lane.b32.xlu0 %v2511_v32, %s2135_s10 }
0x15c4   :  { %954 = vst.msk [vmem:[#allocation5 + $0x18] sm:$0xff] %vm70_vm0, %v951_v59 }
0x15c7   :  { %v663_v61 = vpop.permute.xlu1 %662  ;;  %806 = vrot.lane.b32.xlu0 %v2459_v7, %s2135_s10  ;;  %v1395_v7 = vld [vmem:[%s2644_s4 + $0x10] sm:$0xff]  ;;  %v1398_v1 = vld [vmem:[#allocation5 + $0x8] sm:$0xff] }
0x15c8   :  { %666 = vst.msk [vmem:[#allocation5 + $0x28] sm:$0xff] %vm70_vm0, %v663_v61  ;;  %v1956_v54 = vpack.c.bf16 %v1396_v2, %v1395_v7 }
0x15cb   :  { %v375_v50 = vpop.permute.xlu1 %374  ;;  %518 = vrot.lane.b32.xlu0 %v2398_v25, %s2135_s10  ;;  %v1400_v30 = vld [vmem:[#allocation5 + $0x18] sm:$0xff] }
0x15cc   :  { %378 = vst.msk [vmem:[#allocation5 + $0x38] sm:$0xff] %vm70_vm0, %v375_v50 }
0x15cf   :  { %1375 = vrot.lane.b32.xlu0 %v1367_v63, %s2135_s10  ;;  %v1402_v38 = vld [vmem:[#allocation5 + $0x28] sm:$0xff] }
0x15d3   :  { %v1404_v49 = vld [vmem:[#allocation5 + $0x38] sm:$0xff] }
0x1631   :  { %v1382_v0 = vpop.permute.xlu0 %1381 }
0x1632   :  { %1384 = vst.msk [vmem:[#allocation5] sm:$0xff] %vm70_vm0, %v1382_v0 }
0x1635   :  { %v1095_v32 = vpop.permute.xlu0 %1094 }
0x1636   :  { %1098 = vst.msk [vmem:[#allocation5 + $0x10] sm:$0xff] %vm70_vm0, %v1095_v32 }
0x1639   :  { %v807_v25 = vpop.permute.xlu0 %806  ;;  %v1397_v22 = vld [vmem:[#allocation5] sm:$0xff] }
0x163a   :  { %810 = vst.msk [vmem:[#allocation5 + $0x20] sm:$0xff] %vm70_vm0, %v807_v25  ;;  %1776 = vmatprep.mubr.msk.f32.mxu0 %vm70_vm0, %v1397_v22 }
0x163b   :  { %1777 = vmatmul.mubr.msk.f32.vlgmr.msra.gmra.mrb[14].mxu0 %vm70_vm0, %v1398_v1 }
0x163c   :  { %1955 = vmatpush3.bf16.msra.mxu0 %v1952_v55 }
0x163d   :  { %v519_v3 = vpop.permute.xlu0 %518  ;;  %v1399_v23 = vld [vmem:[#allocation5 + $0x10] sm:$0xff]  ;;  %1957 = vmatprep.subr.bf16.mxu0 %v1956_v54 }
0x163e   :  { %522 = vst.msk [vmem:[#allocation5 + $0x30] sm:$0xff] %vm70_vm0, %v519_v3  ;;  %1779 = vmatprep.mubr.msk.f32.mxu0 %vm70_vm0, %v1399_v23 }
0x163f   :  { %1780 = vmatmul.mubr.msk.f32.gmra.mrb[16].mxu0 %vm70_vm0, %v1400_v30 }
0x1640   :  { %1959 = vmatpush3.bf16.msra.mxu0 %v1956_v54 }
0x1641   :  { %v1376_v31 = vpop.permute.xlu0 %1375  ;;  %v1401_v37 = vld [vmem:[#allocation5 + $0x20] sm:$0xff] }
0x1642   :  { %1379 = vst.msk [vmem:[#allocation4 + $0x38] sm:$0xff] %vm70_vm0, %v1376_v31  ;;  %1782 = vmatprep.mubr.msk.f32.mxu0 %vm70_vm0, %v1401_v37 }
0x1643   :  { %1783 = vmatmul.mubr.msk.f32.gmra.mrb[18].mxu0 %vm70_vm0, %v1402_v38 }
0x1645   :  { %v1403_v42 = vld [vmem:[#allocation5 + $0x30] sm:$0xff] }
0x1646   :  { %1785 = vmatprep.mubr.msk.f32.mxu0 %vm70_vm0, %v1403_v42 }
0x1647   :  { %1786 = vmatmul.mubr.msk.f32.gmra.mrb[20].mxu0 %vm70_vm0, %v1404_v49 }
0x1648   :  { %1796 = vmatprep.mubr.msk.f32.mxu0 %vm70_vm0, %v1385_v4 }
0x1649   :  { %v1392_v11 = vld [vmem:[#allocation4 + $0x38] sm:$0xff] }
0x164b   :  { %1797 = vmatmul.mubr.msk.f32.vlgmr.msra.gmra.mrb[14].mxu0 %vm70_vm0, %v1386_v27 }
0x164c   :  { %1799 = vmatprep.mubr.msk.f32.mxu0 %vm70_vm0, %v1387_v5 }
0x164f   :  { %1800 = vmatmul.mubr.msk.f32.gmra.mrb[16].mxu0 %vm70_vm0, %v1388_v6 }
0x1650   :  { %1802 = vmatprep.mubr.msk.f32.mxu0 %vm70_vm0, %v1389_v8 }
0x1653   :  { %1803 = vmatmul.mubr.msk.f32.gmra.mrb[18].mxu0 %vm70_vm0, %v1390_v9 }
0x1654   :  { %1805 = vmatprep.mubr.msk.f32.mxu0 %vm70_vm0, %v1391_v10 }
0x1657   :  { %1806 = vmatmul.mubr.msk.f32.gmra.mrb[20].mxu0 %vm70_vm0, %v1392_v11 }
0x171e   :  { %v1798_v15 = vpop.f32.mrb[14].mxu0 }
0x171f   :  { %v1675_v17 = vadd.f32 %v1798_v15, %v1743_v13  ;;  %v1628_v18 = vpop.f32.mrb[15].mxu0 }
0x1720   :  { %v1674_v12 = vadd.f32 %v1743_v13, %v1628_v18 }
0x1721   :  { %1684 = vst.msk [vmem:[%s2647_s7 + $0x8] sm:$0xff] %vm1682_vm2, %v1675_v17 }
0x1722   :  { %1683 = vst.msk [vmem:[%s2647_s7] sm:$0xff] %vm1682_vm2, %v1674_v12  ;;  %v1801_v56 = vpop.f32.mrb[16].mxu0 }
0x1723   :  { %v1677_v57 = vadd.f32 %v1801_v56, %v1743_v13  ;;  %v1638_v14 = vpop.f32.mrb[17].mxu0 }
0x1724   :  { %v1676_v47 = vadd.f32 %v1743_v13, %v1638_v14 }
0x1725   :  { %1686 = vst.msk [vmem:[%s2647_s7 + $0x18] sm:$0xff] %vm1682_vm2, %v1677_v57 }
0x1726   :  { %1685 = vst.msk [vmem:[%s2647_s7 + $0x10] sm:$0xff] %vm1682_vm2, %v1676_v47  ;;  %v1804_v60 = vpop.f32.mrb[18].mxu0 }
0x1727   :  { %v1679_v20 = vadd.f32 %v1804_v60, %v1743_v13  ;;  %v1648_v21 = vpop.f32.mrb[19].mxu0 }
0x1728   :  { %v1678_v24 = vadd.f32 %v1743_v13, %v1648_v21 }
0x1729   :  { %1688 = vst.msk [vmem:[%s2647_s7 + $0x28] sm:$0xff] %vm1682_vm2, %v1679_v20 }
0x172a   :  { %1687 = vst.msk [vmem:[%s2647_s7 + $0x20] sm:$0xff] %vm1682_vm2, %v1678_v24  ;;  %v1807_v44 = vpop.f32.mrb[20].mxu0 }
0x172b   :  { %v1681_v26 = vadd.f32 %v1807_v44, %v1743_v13  ;;  %v1658_v29 = vpop.f32.mrb[21].mxu0 }
0x172c   :  { %v1680_v33 = vadd.f32 %v1743_v13, %v1658_v29 }
0x172d   :  { %1690 = vst.msk [vmem:[%s2647_s7 + $0x38] sm:$0xff] %vm1682_vm2, %v1681_v26 }
0x172e   :  { %1689 = vst.msk [vmem:[%s2647_s7 + $0x30] sm:$0xff] %vm1682_vm2, %v1680_v33 }
0x172f   :  { %1695 = vsyncpa [#allocation8], 1 }

</bundles_post_ra>
